<compile_context>
chip_gen: v5e
topology: v5e:2x2
jax: 0.10.0
libtpu: 0.0.40
codegen_flags: <defaults>
</compile_context>

<pallas_src>
import functools

import jax
import jax.numpy as jnp
from jax.experimental import pallas as pl
from jax.experimental.pallas import tpu as pltpu


# ----------------------------- in-kernel math -----------------------------

def _erf(x):
    # Abramowitz & Stegun 7.1.26 rational approximation.
    # The reciprocal is routed to the EUP (approx=True, rel err ~2e-4); the
    # resulting erf error is ~1e-4, far inside the test tolerance.
    a1, a2, a3, a4, a5 = (0.254829592, -0.284496736, 1.421413741,
                          -1.453152027, 1.061405429)
    p = 0.3275911
    sgn = jnp.where(x >= 0.0, 1.0, -1.0).astype(x.dtype)
    ax = jnp.abs(x)
    t = pl.reciprocal(1.0 + p * ax, approx=True)
    poly = ((((a5 * t + a4) * t + a3) * t + a2) * t + a1) * t
    return sgn * (1.0 - poly * jnp.exp(-ax * ax))


def _gelu(x):
    # erf-based GELU, matching reference BERT: 0.5*x*(1+erf(x/sqrt(2)))
    return 0.5 * x * (1.0 + _erf(x * 0.7071067811865476))


def _layernorm(x, g, b, eps):
    mu = jnp.mean(x, axis=-1, keepdims=True)
    d = x - mu
    var = jnp.mean(d * d, axis=-1, keepdims=True)
    return d * jax.lax.rsqrt(var + eps) * g + b


# ------------------------------ fused kernel ------------------------------

def _adapter_kernel(x_ref, down_w_ref, down_b_ref,
                    qkv_w_ref, qkv_b_ref, ao_w_ref, ao_b_ref,
                    ln1_g_ref, ln1_b_ref, i_w_ref, i_b_ref,
                    o_w_ref, o_b_ref, ln2_g_ref, ln2_b_ref,
                    up_w_ref, up_b_ref,
                    out_ref,
                    *, num_layers, num_heads, adapter, seq_len, batch_tile,
                    eps, mm_dtype):
    f32 = jnp.float32
    dh = adapter // num_heads
    scale = 1.0 / float(dh) ** 0.5

    def mm(a, b):
        # MXU matmul with configurable operand dtype, f32 accumulation.
        return jnp.dot(a.astype(mm_dtype), b.astype(mm_dtype),
                       preferred_element_type=f32)

    x = x_ref[...].astype(f32)                                 # (Bt*S, H)

    # ---- down_project ----
    h = mm(x, down_w_ref[...]) + down_b_ref[...]               # (Bt*S, A)

    # ---- BertEncoder layers (h stays resident in vregs/VMEM) ----
    # NOTE: the static layer loop is fine for L=2; for large L (and on v7x
    # with 64 MiB VMEM) move the layers onto an "arbitrary" grid axis and
    # index the weight BlockSpecs by it (layer streaming).
    for l in range(num_layers):
        # fused QKV projection: (Bt*S, 3A)
        qkv = mm(h, qkv_w_ref[l]) + qkv_b_ref[l]
        q = qkv[:, 0 * adapter:1 * adapter]
        k = qkv[:, 1 * adapter:2 * adapter]
        v = qkv[:, 2 * adapter:3 * adapter]

        # per-(batch, head) scaled dot-product attention, accumulated in
        # registers and concatenated once (no VMEM scratch, no masked stores).
        # All-ones attention mask => additive extended mask is identically 0.
        batch_ctx = []
        for b in range(batch_tile):
            r0 = b * seq_len
            head_ctx = []
            for hh in range(num_heads):
                c0 = hh * dh
                qh = q[r0:r0 + seq_len, c0:c0 + dh]
                kh = k[r0:r0 + seq_len, c0:c0 + dh]
                vh = v[r0:r0 + seq_len, c0:c0 + dh]
                s = jax.lax.dot_general(
                    qh.astype(mm_dtype), kh.astype(mm_dtype),
                    (((1,), (1,)), ((), ())),
                    preferred_element_type=f32) * scale
                s = s - jnp.max(s, axis=-1, keepdims=True)
                p = jnp.exp(s)
                p = p * pl.reciprocal(jnp.sum(p, axis=-1, keepdims=True),
                                      approx=True)
                head_ctx.append(mm(p, vh))                     # (S, dh)
            batch_ctx.append(jnp.concatenate(head_ctx, axis=-1))   # (S, A)
        ctx = jnp.concatenate(batch_ctx, axis=0)               # (Bt*S, A)

        # attention output projection + residual + LayerNorm (fused epilogue)
        attn_out = mm(ctx, ao_w_ref[l]) + ao_b_ref[l]
        h1 = _layernorm(attn_out + h, ln1_g_ref[l], ln1_b_ref[l], eps)

        # feed-forward (erf GELU) + residual + LayerNorm (fused epilogue)
        ff = _gelu(mm(h1, i_w_ref[l]) + i_b_ref[l])
        ff2 = mm(ff, o_w_ref[l]) + o_b_ref[l]
        h = _layernorm(ff2 + h1, ln2_g_ref[l], ln2_b_ref[l], eps)

    # ---- up_project + outer residual ----
    up = mm(h, up_w_ref[...]) + up_b_ref[...]
    out_ref[...] = (x + up).astype(out_ref.dtype)


# ------------------------------ host wrapper ------------------------------

def adapter_forward(hidden_states, params, *, num_heads, eps=1e-12,
                    matmul_dtype=jnp.float32, target_rows=256):
    B, S, H = hidden_states.shape
    A = params["down_w"].shape[1]
    L = params["qkv_w"].shape[0]
    I = params["i_w"].shape[2]

    # Fold batch into the row dimension.  Pick the largest batch-tile that
    # divides B with ~target_rows rows per grid step; for the small test this
    # collapses to a single grid step over all B*S rows.
    bt = max(1, min(B, max(1, target_rows // max(S, 1))))
    while B % bt != 0:
        bt -= 1
    n_steps = B // bt
    rows = bt * S
    if n_steps > 1 and rows % 8 != 0:
        # (8,128) rule: partial row tiles must be sublane-aligned; fall back
        # to a single full-extent step.
        bt, n_steps, rows = B, 1, B * S

    x2d = hidden_states.reshape(B * S, H)

    def full(shape):
        n = len(shape)
        # whole-array block, constant across the (parallel) row-tile grid axis
        return pl.BlockSpec(shape, lambda i, _n=n: (0,) * _n)

    kern = functools.partial(_adapter_kernel, num_layers=L,
                             num_heads=num_heads, adapter=A, seq_len=S,
                             batch_tile=bt, eps=eps, mm_dtype=matmul_dtype)

    out2d = pl.pallas_call(
        kern,
        out_shape=jax.ShapeDtypeStruct((B * S, H), hidden_states.dtype),
        grid=(n_steps,),
        in_specs=[
            pl.BlockSpec((rows, H), lambda i: (i, 0)),  # hidden_states rows
            full((H, A)), full((1, A)),                 # down_project
            full((L, A, 3 * A)), full((L, 1, 3 * A)),   # fused QKV
            full((L, A, A)), full((L, 1, A)),           # attention output proj
            full((L, 1, A)), full((L, 1, A)),           # LN1 gamma/beta
            full((L, A, I)), full((L, 1, I)),           # intermediate (GELU)
            full((L, I, A)), full((L, 1, A)),           # FFN output proj
            full((L, 1, A)), full((L, 1, A)),           # LN2 gamma/beta
            full((A, H)), full((1, H)),                 # up_project
        ],
        out_specs=pl.BlockSpec((rows, H), lambda i: (i, 0)),
        compiler_params=pltpu.CompilerParams(
            dimension_semantics=("parallel",),
        ),
    )(x2d,
      params["down_w"], params["down_b"],
      params["qkv_w"], params["qkv_b"],
      params["ao_w"], params["ao_b"],
      params["ln1_g"], params["ln1_b"],
      params["i_w"], params["i_b"],
      params["o_w"], params["o_b"],
      params["ln2_g"], params["ln2_b"],
      params["up_w"], params["up_b"])
    return out2d.reshape(B, S, H)


# --------------------------- pure-JAX reference ----------------------------

def adapter_reference(hidden_states, params, *, num_heads, eps=1e-12):
    B, S, H = hidden_states.shape
    A = params["down_w"].shape[1]
    L = params["qkv_w"].shape[0]
    dh = A // num_heads

    def ln(x, g, b):
        mu = jnp.mean(x, axis=-1, keepdims=True)
        d = x - mu
        var = jnp.mean(d * d, axis=-1, keepdims=True)
        return d * jax.lax.rsqrt(var + eps) * g + b

    x = hidden_states.reshape(B * S, H)
    h = x @ params["down_w"] + params["down_b"][0]
    for l in range(L):
        qkv = h @ params["qkv_w"][l] + params["qkv_b"][l, 0]
        q, k, v = qkv[:, :A], qkv[:, A:2 * A], qkv[:, 2 * A:]
        split = lambda t: t.reshape(B, S, num_heads, dh).transpose(0, 2, 1, 3)
        qh, kh, vh = split(q), split(k), split(v)
        s = jnp.einsum("bhqd,bhkd->bhqk", qh, kh) / jnp.sqrt(float(dh))
        p = jax.nn.softmax(s, axis=-1)
        ctx = jnp.einsum("bhqk,bhkd->bhqd", p, vh)
        ctx = ctx.transpose(0, 2, 1, 3).reshape(B * S, A)
        ao = ctx @ params["ao_w"][l] + params["ao_b"][l, 0]
        h1 = ln(ao + h, params["ln1_g"][l, 0], params["ln1_b"][l, 0])
        z = h1 @ params["i_w"][l] + params["i_b"][l, 0]
        ff = 0.5 * z * (1.0 + jax.scipy.special.erf(z / jnp.sqrt(2.0)))
        ff2 = ff @ params["o_w"][l] + params["o_b"][l, 0]
        h = ln(ff2 + h1, params["ln2_g"][l, 0], params["ln2_b"][l, 0])
    up = h @ params["up_w"] + params["up_b"][0]
    return (x + up).reshape(B, S, H)


# ------------------------------ parameter init ------------------------------

def init_params(key, *, hidden, adapter, intermediate, num_layers,
                adapter_init_range=0.0002, bert_init_range=0.02):
    keys = jax.random.split(key, 2 + 6 * num_layers)
    ki = iter(range(len(keys)))

    def normal(k, shape, std):
        return (std * jax.random.normal(k, shape)).astype(jnp.float32)

    params = {
        "down_w": normal(keys[next(ki)], (hidden, adapter), adapter_init_range),
        "down_b": jnp.zeros((1, adapter), jnp.float32),
        "up_w": normal(keys[next(ki)], (adapter, hidden), adapter_init_range),
        "up_b": jnp.zeros((1, hidden), jnp.float32),
    }
    qkv_w, ao_w, i_w, o_w = [], [], [], []
    for _ in range(num_layers):
        qw = normal(keys[next(ki)], (adapter, adapter), bert_init_range)
        kw = normal(keys[next(ki)], (adapter, adapter), bert_init_range)
        vw = normal(keys[next(ki)], (adapter, adapter), bert_init_range)
        qkv_w.append(jnp.concatenate([qw, kw, vw], axis=1))      # fused (A, 3A)
        ao_w.append(normal(keys[next(ki)], (adapter, adapter), bert_init_range))
        i_w.append(normal(keys[next(ki)], (adapter, intermediate), bert_init_range))
        o_w.append(normal(keys[next(ki)], (intermediate, adapter), bert_init_range))
    L = num_layers
    params.update({
        "qkv_w": jnp.stack(qkv_w),
        "qkv_b": jnp.zeros((L, 1, 3 * adapter), jnp.float32),
        "ao_w": jnp.stack(ao_w),
        "ao_b": jnp.zeros((L, 1, adapter), jnp.float32),
        "ln1_g": jnp.ones((L, 1, adapter), jnp.float32),
        "ln1_b": jnp.zeros((L, 1, adapter), jnp.float32),
        "i_w": jnp.stack(i_w),
        "i_b": jnp.zeros((L, 1, intermediate), jnp.float32),
        "o_w": jnp.stack(o_w),
        "o_b": jnp.zeros((L, 1, adapter), jnp.float32),
        "ln2_g": jnp.ones((L, 1, adapter), jnp.float32),
        "ln2_b": jnp.zeros((L, 1, adapter), jnp.float32),
    })
    return params


if __name__ == "__main__":
    # adapter_config: project_hidden_size=32, adapter_size=16,
    # num_hidden_layers=2, num_attention_heads=2, intermediate_size=64
    B, S, H = 2, 8, 32
    A, NH, I, L = 16, 2, 64, 2

    key = jax.random.PRNGKey(0)
    k_x, k_p = jax.random.split(key)
    hidden_states = jax.random.normal(k_x, (B, S, H), dtype=jnp.float32)
    params = init_params(k_p, hidden=H, adapter=A, intermediate=I, num_layers=L)

    out = adapter_forward(hidden_states, params, num_heads=NH)
    out = jax.block_until_ready(out)
    assert out.shape == (B, S, H) and out.dtype == jnp.float32

    ref = adapter_reference(hidden_states, params, num_heads=NH)
    max_diff = float(jnp.max(jnp.abs(out - ref)))
    assert jnp.allclose(out, ref, atol=1e-3, rtol=1e-3), f"max abs diff {max_diff:.3e}"

    print("KERNEL_OK")
</pallas_src>

<mosaic_0001>
module attributes {stable_mosaic.version = 11 : i64} {
  func.func @_adapter_kernel(%arg0: i32, %arg1: memref<16x32xf32, #tpu.memory_space<vmem>>, %arg2: memref<32x16xf32, #tpu.memory_space<vmem>>, %arg3: memref<1x16xf32, #tpu.memory_space<vmem>>, %arg4: memref<2x16x48xf32, #tpu.memory_space<vmem>>, %arg5: memref<2x1x48xf32, #tpu.memory_space<vmem>>, %arg6: memref<2x16x16xf32, #tpu.memory_space<vmem>>, %arg7: memref<2x1x16xf32, #tpu.memory_space<vmem>>, %arg8: memref<2x1x16xf32, #tpu.memory_space<vmem>>, %arg9: memref<2x1x16xf32, #tpu.memory_space<vmem>>, %arg10: memref<2x16x64xf32, #tpu.memory_space<vmem>>, %arg11: memref<2x1x64xf32, #tpu.memory_space<vmem>>, %arg12: memref<2x64x16xf32, #tpu.memory_space<vmem>>, %arg13: memref<2x1x16xf32, #tpu.memory_space<vmem>>, %arg14: memref<2x1x16xf32, #tpu.memory_space<vmem>>, %arg15: memref<2x1x16xf32, #tpu.memory_space<vmem>>, %arg16: memref<16x32xf32, #tpu.memory_space<vmem>>, %arg17: memref<1x32xf32, #tpu.memory_space<vmem>>, %arg18: memref<16x32xf32, #tpu.memory_space<vmem>>) attributes {dimension_semantics = [#tpu.dimension_semantics<parallel>], iteration_bounds = array<i64: 1>, scalar_prefetch = 0 : i64, scratch_operands = 0 : i64, tpu.core_type = #tpu.core_type<tc>, window_params = [{transform_indices = @transform_0, window_bounds = array<i64: 16, 32>}, {pipeline_mode = #tpu.pipeline_mode<synchronous>, transform_indices = @transform_1, window_bounds = array<i64: 32, 16>}, {pipeline_mode = #tpu.pipeline_mode<synchronous>, transform_indices = @transform_2, window_bounds = array<i64: 1, 16>}, {pipeline_mode = #tpu.pipeline_mode<synchronous>, transform_indices = @transform_3, window_bounds = array<i64: 2, 16, 48>}, {pipeline_mode = #tpu.pipeline_mode<synchronous>, transform_indices = @transform_4, window_bounds = array<i64: 2, 1, 48>}, {pipeline_mode = #tpu.pipeline_mode<synchronous>, transform_indices = @transform_5, window_bounds = array<i64: 2, 16, 16>}, {pipeline_mode = #tpu.pipeline_mode<synchronous>, transform_indices = @transform_6, window_bounds = array<i64: 2, 1, 16>}, {pipeline_mode = #tpu.pipeline_mode<synchronous>, transform_indices = @transform_7, window_bounds = array<i64: 2, 1, 16>}, {pipeline_mode = #tpu.pipeline_mode<synchronous>, transform_indices = @transform_8, window_bounds = array<i64: 2, 1, 16>}, {pipeline_mode = #tpu.pipeline_mode<synchronous>, transform_indices = @transform_9, window_bounds = array<i64: 2, 16, 64>}, {pipeline_mode = #tpu.pipeline_mode<synchronous>, transform_indices = @transform_10, window_bounds = array<i64: 2, 1, 64>}, {pipeline_mode = #tpu.pipeline_mode<synchronous>, transform_indices = @transform_11, window_bounds = array<i64: 2, 64, 16>}, {pipeline_mode = #tpu.pipeline_mode<synchronous>, transform_indices = @transform_12, window_bounds = array<i64: 2, 1, 16>}, {pipeline_mode = #tpu.pipeline_mode<synchronous>, transform_indices = @transform_13, window_bounds = array<i64: 2, 1, 16>}, {pipeline_mode = #tpu.pipeline_mode<synchronous>, transform_indices = @transform_14, window_bounds = array<i64: 2, 1, 16>}, {pipeline_mode = #tpu.pipeline_mode<synchronous>, transform_indices = @transform_15, window_bounds = array<i64: 16, 32>}, {pipeline_mode = #tpu.pipeline_mode<synchronous>, transform_indices = @transform_16, window_bounds = array<i64: 1, 32>}, {transform_indices = @transform_17, window_bounds = array<i64: 16, 32>}]} {
    %c0 = arith.constant 0 : index
    %c0_0 = arith.constant 0 : index
    %0 = vector.load %arg1[%c0, %c0_0] : memref<16x32xf32, #tpu.memory_space<vmem>>, vector<16x32xf32>
    %c0_1 = arith.constant 0 : index
    %c0_2 = arith.constant 0 : index
    %1 = vector.load %arg2[%c0_1, %c0_2] : memref<32x16xf32, #tpu.memory_space<vmem>>, vector<32x16xf32>
    %cst = arith.constant dense<0.000000e+00> : vector<16x16xf32>
    %2 = tpu.matmul %0, %1, %cst {dimension_numbers = #tpu.dot_dimension_numbers<[1], [0], [0], [1], [0, 0, 1, 1], [], []>} : vector<16x32xf32>, vector<32x16xf32>, vector<16x16xf32> -> vector<16x16xf32>
    %c0_3 = arith.constant 0 : index
    %c0_4 = arith.constant 0 : index
    %3 = vector.load %arg3[%c0_3, %c0_4] : memref<1x16xf32, #tpu.memory_space<vmem>>, vector<1x16xf32>
    %4 = vector.broadcast %3 : vector<1x16xf32> to vector<16x16xf32>
    %5 = arith.addf %2, %4 : vector<16x16xf32>
    %c0_5 = arith.constant 0 : index
    %c0_6 = arith.constant 0 : index
    %c0_7 = arith.constant 0 : index
    %6 = vector.load %arg4[%c0_5, %c0_6, %c0_7] : memref<2x16x48xf32, #tpu.memory_space<vmem>>, vector<1x16x48xf32>
    %7 = vector.shape_cast %6 : vector<1x16x48xf32> to vector<16x48xf32>
    %cst_8 = arith.constant dense<0.000000e+00> : vector<16x48xf32>
    %8 = tpu.matmul %5, %7, %cst_8 {dimension_numbers = #tpu.dot_dimension_numbers<[1], [0], [0], [1], [0, 0, 1, 1], [], []>} : vector<16x16xf32>, vector<16x48xf32>, vector<16x48xf32> -> vector<16x48xf32>
    %c0_9 = arith.constant 0 : index
    %c0_10 = arith.constant 0 : index
    %c0_11 = arith.constant 0 : index
    %9 = vector.load %arg5[%c0_9, %c0_10, %c0_11] : memref<2x1x48xf32, #tpu.memory_space<vmem>>, vector<1x1x48xf32>
    %10 = vector.shape_cast %9 : vector<1x1x48xf32> to vector<1x48xf32>
    %11 = vector.broadcast %10 : vector<1x48xf32> to vector<16x48xf32>
    %12 = arith.addf %8, %11 : vector<16x48xf32>
    %13 = vector.extract_strided_slice %12 {offsets = [0, 0], sizes = [16, 16], strides = [1, 1]} : vector<16x48xf32> to vector<16x16xf32>
    %14 = vector.extract_strided_slice %12 {offsets = [0, 16], sizes = [16, 16], strides = [1, 1]} : vector<16x48xf32> to vector<16x16xf32>
    %15 = vector.extract_strided_slice %12 {offsets = [0, 32], sizes = [16, 16], strides = [1, 1]} : vector<16x48xf32> to vector<16x16xf32>
    %16 = vector.extract_strided_slice %13 {offsets = [0, 0], sizes = [8, 8], strides = [1, 1]} : vector<16x16xf32> to vector<8x8xf32>
    %17 = vector.extract_strided_slice %14 {offsets = [0, 0], sizes = [8, 8], strides = [1, 1]} : vector<16x16xf32> to vector<8x8xf32>
    %18 = vector.extract_strided_slice %15 {offsets = [0, 0], sizes = [8, 8], strides = [1, 1]} : vector<16x16xf32> to vector<8x8xf32>
    %cst_12 = arith.constant dense<0.000000e+00> : vector<8x8xf32>
    %19 = tpu.matmul %16, %17, %cst_12 {dimension_numbers = #tpu.dot_dimension_numbers<[1], [1], [0], [0], [0, 0, 1, 0], [], []>} : vector<8x8xf32>, vector<8x8xf32>, vector<8x8xf32> -> vector<8x8xf32>
    %cst_13 = arith.constant 0.353553385 : f32
    %20 = vector.broadcast %cst_13 : f32 to vector<8x8xf32>
    %21 = arith.mulf %19, %20 : vector<8x8xf32>
    %cst_14 = arith.constant dense<0xFF800000> : vector<8xf32>
    %22 = vector.multi_reduction <maximumf>, %21, %cst_14 [1] : vector<8x8xf32> to vector<8xf32>
    %23 = vector.shape_cast %22 : vector<8xf32> to vector<8x1xf32>
    %24 = vector.broadcast %23 : vector<8x1xf32> to vector<8x8xf32>
    %25 = arith.subf %21, %24 : vector<8x8xf32>
    %26 = math.exp %25 : vector<8x8xf32>
    %cst_15 = arith.constant dense<0.000000e+00> : vector<8xf32>
    %27 = vector.multi_reduction <add>, %26, %cst_15 [1] : vector<8x8xf32> to vector<8xf32>
    %28 = vector.shape_cast %27 : vector<8xf32> to vector<8x1xf32>
    %29 = tpu.reciprocal %28 {approx = true} : vector<8x1xf32> -> vector<8x1xf32>
    %30 = vector.broadcast %29 : vector<8x1xf32> to vector<8x8xf32>
    %31 = arith.mulf %26, %30 : vector<8x8xf32>
    %cst_16 = arith.constant dense<0.000000e+00> : vector<8x8xf32>
    %32 = tpu.matmul %31, %18, %cst_16 {dimension_numbers = #tpu.dot_dimension_numbers<[1], [0], [0], [1], [0, 0, 1, 1], [], []>} : vector<8x8xf32>, vector<8x8xf32>, vector<8x8xf32> -> vector<8x8xf32>
    %33 = vector.extract_strided_slice %13 {offsets = [0, 8], sizes = [8, 8], strides = [1, 1]} : vector<16x16xf32> to vector<8x8xf32>
    %34 = vector.extract_strided_slice %14 {offsets = [0, 8], sizes = [8, 8], strides = [1, 1]} : vector<16x16xf32> to vector<8x8xf32>
    %35 = vector.extract_strided_slice %15 {offsets = [0, 8], sizes = [8, 8], strides = [1, 1]} : vector<16x16xf32> to vector<8x8xf32>
    %cst_17 = arith.constant dense<0.000000e+00> : vector<8x8xf32>
    %36 = tpu.matmul %33, %34, %cst_17 {dimension_numbers = #tpu.dot_dimension_numbers<[1], [1], [0], [0], [0, 0, 1, 0], [], []>} : vector<8x8xf32>, vector<8x8xf32>, vector<8x8xf32> -> vector<8x8xf32>
    %cst_18 = arith.constant 0.353553385 : f32
    %37 = vector.broadcast %cst_18 : f32 to vector<8x8xf32>
    %38 = arith.mulf %36, %37 : vector<8x8xf32>
    %cst_19 = arith.constant dense<0xFF800000> : vector<8xf32>
    %39 = vector.multi_reduction <maximumf>, %38, %cst_19 [1] : vector<8x8xf32> to vector<8xf32>
    %40 = vector.shape_cast %39 : vector<8xf32> to vector<8x1xf32>
    %41 = vector.broadcast %40 : vector<8x1xf32> to vector<8x8xf32>
    %42 = arith.subf %38, %41 : vector<8x8xf32>
    %43 = math.exp %42 : vector<8x8xf32>
    %cst_20 = arith.constant dense<0.000000e+00> : vector<8xf32>
    %44 = vector.multi_reduction <add>, %43, %cst_20 [1] : vector<8x8xf32> to vector<8xf32>
    %45 = vector.shape_cast %44 : vector<8xf32> to vector<8x1xf32>
    %46 = tpu.reciprocal %45 {approx = true} : vector<8x1xf32> -> vector<8x1xf32>
    %47 = vector.broadcast %46 : vector<8x1xf32> to vector<8x8xf32>
    %48 = arith.mulf %43, %47 : vector<8x8xf32>
    %cst_21 = arith.constant dense<0.000000e+00> : vector<8x8xf32>
    %49 = tpu.matmul %48, %35, %cst_21 {dimension_numbers = #tpu.dot_dimension_numbers<[1], [0], [0], [1], [0, 0, 1, 1], [], []>} : vector<8x8xf32>, vector<8x8xf32>, vector<8x8xf32> -> vector<8x8xf32>
    %50 = tpu.concatenate %32, %49 in 1 : vector<8x8xf32>, vector<8x8xf32> -> vector<8x16xf32>
    %51 = vector.extract_strided_slice %13 {offsets = [8, 0], sizes = [8, 8], strides = [1, 1]} : vector<16x16xf32> to vector<8x8xf32>
    %52 = vector.extract_strided_slice %14 {offsets = [8, 0], sizes = [8, 8], strides = [1, 1]} : vector<16x16xf32> to vector<8x8xf32>
    %53 = vector.extract_strided_slice %15 {offsets = [8, 0], sizes = [8, 8], strides = [1, 1]} : vector<16x16xf32> to vector<8x8xf32>
    %cst_22 = arith.constant dense<0.000000e+00> : vector<8x8xf32>
    %54 = tpu.matmul %51, %52, %cst_22 {dimension_numbers = #tpu.dot_dimension_numbers<[1], [1], [0], [0], [0, 0, 1, 0], [], []>} : vector<8x8xf32>, vector<8x8xf32>, vector<8x8xf32> -> vector<8x8xf32>
    %cst_23 = arith.constant 0.353553385 : f32
    %55 = vector.broadcast %cst_23 : f32 to vector<8x8xf32>
    %56 = arith.mulf %54, %55 : vector<8x8xf32>
    %cst_24 = arith.constant dense<0xFF800000> : vector<8xf32>
    %57 = vector.multi_reduction <maximumf>, %56, %cst_24 [1] : vector<8x8xf32> to vector<8xf32>
    %58 = vector.shape_cast %57 : vector<8xf32> to vector<8x1xf32>
    %59 = vector.broadcast %58 : vector<8x1xf32> to vector<8x8xf32>
    %60 = arith.subf %56, %59 : vector<8x8xf32>
    %61 = math.exp %60 : vector<8x8xf32>
    %cst_25 = arith.constant dense<0.000000e+00> : vector<8xf32>
    %62 = vector.multi_reduction <add>, %61, %cst_25 [1] : vector<8x8xf32> to vector<8xf32>
    %63 = vector.shape_cast %62 : vector<8xf32> to vector<8x1xf32>
    %64 = tpu.reciprocal %63 {approx = true} : vector<8x1xf32> -> vector<8x1xf32>
    %65 = vector.broadcast %64 : vector<8x1xf32> to vector<8x8xf32>
    %66 = arith.mulf %61, %65 : vector<8x8xf32>
    %cst_26 = arith.constant dense<0.000000e+00> : vector<8x8xf32>
    %67 = tpu.matmul %66, %53, %cst_26 {dimension_numbers = #tpu.dot_dimension_numbers<[1], [0], [0], [1], [0, 0, 1, 1], [], []>} : vector<8x8xf32>, vector<8x8xf32>, vector<8x8xf32> -> vector<8x8xf32>
    %68 = vector.extract_strided_slice %13 {offsets = [8, 8], sizes = [8, 8], strides = [1, 1]} : vector<16x16xf32> to vector<8x8xf32>
    %69 = vector.extract_strided_slice %14 {offsets = [8, 8], sizes = [8, 8], strides = [1, 1]} : vector<16x16xf32> to vector<8x8xf32>
    %70 = vector.extract_strided_slice %15 {offsets = [8, 8], sizes = [8, 8], strides = [1, 1]} : vector<16x16xf32> to vector<8x8xf32>
    %cst_27 = arith.constant dense<0.000000e+00> : vector<8x8xf32>
    %71 = tpu.matmul %68, %69, %cst_27 {dimension_numbers = #tpu.dot_dimension_numbers<[1], [1], [0], [0], [0, 0, 1, 0], [], []>} : vector<8x8xf32>, vector<8x8xf32>, vector<8x8xf32> -> vector<8x8xf32>
    %cst_28 = arith.constant 0.353553385 : f32
    %72 = vector.broadcast %cst_28 : f32 to vector<8x8xf32>
    %73 = arith.mulf %71, %72 : vector<8x8xf32>
    %cst_29 = arith.constant dense<0xFF800000> : vector<8xf32>
    %74 = vector.multi_reduction <maximumf>, %73, %cst_29 [1] : vector<8x8xf32> to vector<8xf32>
    %75 = vector.shape_cast %74 : vector<8xf32> to vector<8x1xf32>
    %76 = vector.broadcast %75 : vector<8x1xf32> to vector<8x8xf32>
    %77 = arith.subf %73, %76 : vector<8x8xf32>
    %78 = math.exp %77 : vector<8x8xf32>
    %cst_30 = arith.constant dense<0.000000e+00> : vector<8xf32>
    %79 = vector.multi_reduction <add>, %78, %cst_30 [1] : vector<8x8xf32> to vector<8xf32>
    %80 = vector.shape_cast %79 : vector<8xf32> to vector<8x1xf32>
    %81 = tpu.reciprocal %80 {approx = true} : vector<8x1xf32> -> vector<8x1xf32>
    %82 = vector.broadcast %81 : vector<8x1xf32> to vector<8x8xf32>
    %83 = arith.mulf %78, %82 : vector<8x8xf32>
    %cst_31 = arith.constant dense<0.000000e+00> : vector<8x8xf32>
    %84 = tpu.matmul %83, %70, %cst_31 {dimension_numbers = #tpu.dot_dimension_numbers<[1], [0], [0], [1], [0, 0, 1, 1], [], []>} : vector<8x8xf32>, vector<8x8xf32>, vector<8x8xf32> -> vector<8x8xf32>
    %85 = tpu.concatenate %67, %84 in 1 : vector<8x8xf32>, vector<8x8xf32> -> vector<8x16xf32>
    %86 = tpu.concatenate %50, %85 in 0 : vector<8x16xf32>, vector<8x16xf32> -> vector<16x16xf32>
    %c0_32 = arith.constant 0 : index
    %c0_33 = arith.constant 0 : index
    %c0_34 = arith.constant 0 : index
    %87 = vector.load %arg6[%c0_32, %c0_33, %c0_34] : memref<2x16x16xf32, #tpu.memory_space<vmem>>, vector<1x16x16xf32>
    %88 = vector.shape_cast %87 : vector<1x16x16xf32> to vector<16x16xf32>
    %cst_35 = arith.constant dense<0.000000e+00> : vector<16x16xf32>
    %89 = tpu.matmul %86, %88, %cst_35 {dimension_numbers = #tpu.dot_dimension_numbers<[1], [0], [0], [1], [0, 0, 1, 1], [], []>} : vector<16x16xf32>, vector<16x16xf32>, vector<16x16xf32> -> vector<16x16xf32>
    %c0_36 = arith.constant 0 : index
    %c0_37 = arith.constant 0 : index
    %c0_38 = arith.constant 0 : index
    %90 = vector.load %arg7[%c0_36, %c0_37, %c0_38] : memref<2x1x16xf32, #tpu.memory_space<vmem>>, vector<1x1x16xf32>
    %91 = vector.shape_cast %90 : vector<1x1x16xf32> to vector<1x16xf32>
    %92 = vector.broadcast %91 : vector<1x16xf32> to vector<16x16xf32>
    %93 = arith.addf %89, %92 : vector<16x16xf32>
    %94 = arith.addf %93, %5 : vector<16x16xf32>
    %c0_39 = arith.constant 0 : index
    %c0_40 = arith.constant 0 : index
    %c0_41 = arith.constant 0 : index
    %95 = vector.load %arg8[%c0_39, %c0_40, %c0_41] : memref<2x1x16xf32, #tpu.memory_space<vmem>>, vector<1x1x16xf32>
    %96 = vector.shape_cast %95 : vector<1x1x16xf32> to vector<1x16xf32>
    %c0_42 = arith.constant 0 : index
    %c0_43 = arith.constant 0 : index
    %c0_44 = arith.constant 0 : index
    %97 = vector.load %arg9[%c0_42, %c0_43, %c0_44] : memref<2x1x16xf32, #tpu.memory_space<vmem>>, vector<1x1x16xf32>
    %98 = vector.shape_cast %97 : vector<1x1x16xf32> to vector<1x16xf32>
    %cst_45 = arith.constant dense<0.000000e+00> : vector<16xf32>
    %99 = vector.multi_reduction <add>, %94, %cst_45 [1] : vector<16x16xf32> to vector<16xf32>
    %100 = vector.shape_cast %99 : vector<16xf32> to vector<16x1xf32>
    %cst_46 = arith.constant 1.600000e+01 : f32
    %101 = vector.broadcast %cst_46 : f32 to vector<16x1xf32>
    %102 = arith.divf %100, %101 : vector<16x1xf32>
    %103 = vector.broadcast %102 : vector<16x1xf32> to vector<16x16xf32>
    %104 = arith.subf %94, %103 : vector<16x16xf32>
    %105 = arith.mulf %104, %104 : vector<16x16xf32>
    %cst_47 = arith.constant dense<0.000000e+00> : vector<16xf32>
    %106 = vector.multi_reduction <add>, %105, %cst_47 [1] : vector<16x16xf32> to vector<16xf32>
    %107 = vector.shape_cast %106 : vector<16xf32> to vector<16x1xf32>
    %cst_48 = arith.constant 1.600000e+01 : f32
    %108 = vector.broadcast %cst_48 : f32 to vector<16x1xf32>
    %109 = arith.divf %107, %108 : vector<16x1xf32>
    %cst_49 = arith.constant 9.99999996E-13 : f32
    %110 = vector.broadcast %cst_49 : f32 to vector<16x1xf32>
    %111 = arith.addf %109, %110 : vector<16x1xf32>
    %112 = math.rsqrt %111 : vector<16x1xf32>
    %113 = vector.broadcast %112 : vector<16x1xf32> to vector<16x16xf32>
    %114 = arith.mulf %104, %113 : vector<16x16xf32>
    %115 = vector.broadcast %96 : vector<1x16xf32> to vector<16x16xf32>
    %116 = arith.mulf %114, %115 : vector<16x16xf32>
    %117 = vector.broadcast %98 : vector<1x16xf32> to vector<16x16xf32>
    %118 = arith.addf %116, %117 : vector<16x16xf32>
    %c0_50 = arith.constant 0 : index
    %c0_51 = arith.constant 0 : index
    %c0_52 = arith.constant 0 : index
    %119 = vector.load %arg10[%c0_50, %c0_51, %c0_52] : memref<2x16x64xf32, #tpu.memory_space<vmem>>, vector<1x16x64xf32>
    %120 = vector.shape_cast %119 : vector<1x16x64xf32> to vector<16x64xf32>
    %cst_53 = arith.constant dense<0.000000e+00> : vector<16x64xf32>
    %121 = tpu.matmul %118, %120, %cst_53 {dimension_numbers = #tpu.dot_dimension_numbers<[1], [0], [0], [1], [0, 0, 1, 1], [], []>} : vector<16x16xf32>, vector<16x64xf32>, vector<16x64xf32> -> vector<16x64xf32>
    %c0_54 = arith.constant 0 : index
    %c0_55 = arith.constant 0 : index
    %c0_56 = arith.constant 0 : index
    %122 = vector.load %arg11[%c0_54, %c0_55, %c0_56] : memref<2x1x64xf32, #tpu.memory_space<vmem>>, vector<1x1x64xf32>
    %123 = vector.shape_cast %122 : vector<1x1x64xf32> to vector<1x64xf32>
    %124 = vector.broadcast %123 : vector<1x64xf32> to vector<16x64xf32>
    %125 = arith.addf %121, %124 : vector<16x64xf32>
    %cst_57 = arith.constant 5.000000e-01 : f32
    %126 = vector.broadcast %cst_57 : f32 to vector<16x64xf32>
    %127 = arith.mulf %126, %125 : vector<16x64xf32>
    %cst_58 = arith.constant 0.707106769 : f32
    %128 = vector.broadcast %cst_58 : f32 to vector<16x64xf32>
    %129 = arith.mulf %125, %128 : vector<16x64xf32>
    %cst_59 = arith.constant 0.000000e+00 : f32
    %130 = vector.broadcast %cst_59 : f32 to vector<16x64xf32>
    %131 = arith.cmpf oge, %129, %130 : vector<16x64xf32>
    %cst_60 = arith.constant 1.000000e+00 : f32
    %cst_61 = arith.constant -1.000000e+00 : f32
    %132 = vector.broadcast %cst_60 : f32 to vector<16x64xf32>
    %133 = vector.broadcast %cst_61 : f32 to vector<16x64xf32>
    %134 = arith.select %131, %132, %133 : vector<16x64xi1>, vector<16x64xf32>
    %135 = math.absf %129 : vector<16x64xf32>
    %cst_62 = arith.constant 0.327591091 : f32
    %136 = vector.broadcast %cst_62 : f32 to vector<16x64xf32>
    %137 = arith.mulf %136, %135 : vector<16x64xf32>
    %cst_63 = arith.constant 1.000000e+00 : f32
    %138 = vector.broadcast %cst_63 : f32 to vector<16x64xf32>
    %139 = arith.addf %138, %137 : vector<16x64xf32>
    %140 = tpu.reciprocal %139 {approx = true} : vector<16x64xf32> -> vector<16x64xf32>
    %cst_64 = arith.constant 1.06140542 : f32
    %141 = vector.broadcast %cst_64 : f32 to vector<16x64xf32>
    %142 = arith.mulf %141, %140 : vector<16x64xf32>
    %cst_65 = arith.constant -1.45315206 : f32
    %143 = vector.broadcast %cst_65 : f32 to vector<16x64xf32>
    %144 = arith.addf %142, %143 : vector<16x64xf32>
    %145 = arith.mulf %144, %140 : vector<16x64xf32>
    %cst_66 = arith.constant 1.42141378 : f32
    %146 = vector.broadcast %cst_66 : f32 to vector<16x64xf32>
    %147 = arith.addf %145, %146 : vector<16x64xf32>
    %148 = arith.mulf %147, %140 : vector<16x64xf32>
    %cst_67 = arith.constant -0.284496725 : f32
    %149 = vector.broadcast %cst_67 : f32 to vector<16x64xf32>
    %150 = arith.addf %148, %149 : vector<16x64xf32>
    %151 = arith.mulf %150, %140 : vector<16x64xf32>
    %cst_68 = arith.constant 0.254829586 : f32
    %152 = vector.broadcast %cst_68 : f32 to vector<16x64xf32>
    %153 = arith.addf %151, %152 : vector<16x64xf32>
    %154 = arith.mulf %153, %140 : vector<16x64xf32>
    %cst_69 = arith.constant 0.000000e+00 : f32
    %155 = vector.broadcast %cst_69 : f32 to vector<16x64xf32>
    %156 = arith.subf %155, %135 : vector<16x64xf32>
    %157 = arith.mulf %156, %135 : vector<16x64xf32>
    %158 = math.exp %157 : vector<16x64xf32>
    %159 = arith.mulf %154, %158 : vector<16x64xf32>
    %cst_70 = arith.constant 1.000000e+00 : f32
    %160 = vector.broadcast %cst_70 : f32 to vector<16x64xf32>
    %161 = arith.subf %160, %159 : vector<16x64xf32>
    %162 = arith.mulf %134, %161 : vector<16x64xf32>
    %cst_71 = arith.constant 1.000000e+00 : f32
    %163 = vector.broadcast %cst_71 : f32 to vector<16x64xf32>
    %164 = arith.addf %163, %162 : vector<16x64xf32>
    %165 = arith.mulf %127, %164 : vector<16x64xf32>
    %c0_72 = arith.constant 0 : index
    %c0_73 = arith.constant 0 : index
    %c0_74 = arith.constant 0 : index
    %166 = vector.load %arg12[%c0_72, %c0_73, %c0_74] : memref<2x64x16xf32, #tpu.memory_space<vmem>>, vector<1x64x16xf32>
    %167 = vector.shape_cast %166 : vector<1x64x16xf32> to vector<64x16xf32>
    %cst_75 = arith.constant dense<0.000000e+00> : vector<16x16xf32>
    %168 = tpu.matmul %165, %167, %cst_75 {dimension_numbers = #tpu.dot_dimension_numbers<[1], [0], [0], [1], [0, 0, 1, 1], [], []>} : vector<16x64xf32>, vector<64x16xf32>, vector<16x16xf32> -> vector<16x16xf32>
    %c0_76 = arith.constant 0 : index
    %c0_77 = arith.constant 0 : index
    %c0_78 = arith.constant 0 : index
    %169 = vector.load %arg13[%c0_76, %c0_77, %c0_78] : memref<2x1x16xf32, #tpu.memory_space<vmem>>, vector<1x1x16xf32>
    %170 = vector.shape_cast %169 : vector<1x1x16xf32> to vector<1x16xf32>
    %171 = vector.broadcast %170 : vector<1x16xf32> to vector<16x16xf32>
    %172 = arith.addf %168, %171 : vector<16x16xf32>
    %173 = arith.addf %172, %118 : vector<16x16xf32>
    %c0_79 = arith.constant 0 : index
    %c0_80 = arith.constant 0 : index
    %c0_81 = arith.constant 0 : index
    %174 = vector.load %arg14[%c0_79, %c0_80, %c0_81] : memref<2x1x16xf32, #tpu.memory_space<vmem>>, vector<1x1x16xf32>
    %175 = vector.shape_cast %174 : vector<1x1x16xf32> to vector<1x16xf32>
    %c0_82 = arith.constant 0 : index
    %c0_83 = arith.constant 0 : index
    %c0_84 = arith.constant 0 : index
    %176 = vector.load %arg15[%c0_82, %c0_83, %c0_84] : memref<2x1x16xf32, #tpu.memory_space<vmem>>, vector<1x1x16xf32>
    %177 = vector.shape_cast %176 : vector<1x1x16xf32> to vector<1x16xf32>
    %cst_85 = arith.constant dense<0.000000e+00> : vector<16xf32>
    %178 = vector.multi_reduction <add>, %173, %cst_85 [1] : vector<16x16xf32> to vector<16xf32>
    %179 = vector.shape_cast %178 : vector<16xf32> to vector<16x1xf32>
    %cst_86 = arith.constant 1.600000e+01 : f32
    %180 = vector.broadcast %cst_86 : f32 to vector<16x1xf32>
    %181 = arith.divf %179, %180 : vector<16x1xf32>
    %182 = vector.broadcast %181 : vector<16x1xf32> to vector<16x16xf32>
    %183 = arith.subf %173, %182 : vector<16x16xf32>
    %184 = arith.mulf %183, %183 : vector<16x16xf32>
    %cst_87 = arith.constant dense<0.000000e+00> : vector<16xf32>
    %185 = vector.multi_reduction <add>, %184, %cst_87 [1] : vector<16x16xf32> to vector<16xf32>
    %186 = vector.shape_cast %185 : vector<16xf32> to vector<16x1xf32>
    %cst_88 = arith.constant 1.600000e+01 : f32
    %187 = vector.broadcast %cst_88 : f32 to vector<16x1xf32>
    %188 = arith.divf %186, %187 : vector<16x1xf32>
    %cst_89 = arith.constant 9.99999996E-13 : f32
    %189 = vector.broadcast %cst_89 : f32 to vector<16x1xf32>
    %190 = arith.addf %188, %189 : vector<16x1xf32>
    %191 = math.rsqrt %190 : vector<16x1xf32>
    %192 = vector.broadcast %191 : vector<16x1xf32> to vector<16x16xf32>
    %193 = arith.mulf %183, %192 : vector<16x16xf32>
    %194 = vector.broadcast %175 : vector<1x16xf32> to vector<16x16xf32>
    %195 = arith.mulf %193, %194 : vector<16x16xf32>
    %196 = vector.broadcast %177 : vector<1x16xf32> to vector<16x16xf32>
    %197 = arith.addf %195, %196 : vector<16x16xf32>
    %c1 = arith.constant 1 : index
    %c0_90 = arith.constant 0 : index
    %c0_91 = arith.constant 0 : index
    %198 = vector.load %arg4[%c1, %c0_90, %c0_91] : memref<2x16x48xf32, #tpu.memory_space<vmem>>, vector<1x16x48xf32>
    %199 = vector.shape_cast %198 : vector<1x16x48xf32> to vector<16x48xf32>
    %cst_92 = arith.constant dense<0.000000e+00> : vector<16x48xf32>
    %200 = tpu.matmul %197, %199, %cst_92 {dimension_numbers = #tpu.dot_dimension_numbers<[1], [0], [0], [1], [0, 0, 1, 1], [], []>} : vector<16x16xf32>, vector<16x48xf32>, vector<16x48xf32> -> vector<16x48xf32>
    %c1_93 = arith.constant 1 : index
    %c0_94 = arith.constant 0 : index
    %c0_95 = arith.constant 0 : index
    %201 = vector.load %arg5[%c1_93, %c0_94, %c0_95] : memref<2x1x48xf32, #tpu.memory_space<vmem>>, vector<1x1x48xf32>
    %202 = vector.shape_cast %201 : vector<1x1x48xf32> to vector<1x48xf32>
    %203 = vector.broadcast %202 : vector<1x48xf32> to vector<16x48xf32>
    %204 = arith.addf %200, %203 : vector<16x48xf32>
    %205 = vector.extract_strided_slice %204 {offsets = [0, 0], sizes = [16, 16], strides = [1, 1]} : vector<16x48xf32> to vector<16x16xf32>
    %206 = vector.extract_strided_slice %204 {offsets = [0, 16], sizes = [16, 16], strides = [1, 1]} : vector<16x48xf32> to vector<16x16xf32>
    %207 = vector.extract_strided_slice %204 {offsets = [0, 32], sizes = [16, 16], strides = [1, 1]} : vector<16x48xf32> to vector<16x16xf32>
    %208 = vector.extract_strided_slice %205 {offsets = [0, 0], sizes = [8, 8], strides = [1, 1]} : vector<16x16xf32> to vector<8x8xf32>
    %209 = vector.extract_strided_slice %206 {offsets = [0, 0], sizes = [8, 8], strides = [1, 1]} : vector<16x16xf32> to vector<8x8xf32>
    %210 = vector.extract_strided_slice %207 {offsets = [0, 0], sizes = [8, 8], strides = [1, 1]} : vector<16x16xf32> to vector<8x8xf32>
    %cst_96 = arith.constant dense<0.000000e+00> : vector<8x8xf32>
    %211 = tpu.matmul %208, %209, %cst_96 {dimension_numbers = #tpu.dot_dimension_numbers<[1], [1], [0], [0], [0, 0, 1, 0], [], []>} : vector<8x8xf32>, vector<8x8xf32>, vector<8x8xf32> -> vector<8x8xf32>
    %cst_97 = arith.constant 0.353553385 : f32
    %212 = vector.broadcast %cst_97 : f32 to vector<8x8xf32>
    %213 = arith.mulf %211, %212 : vector<8x8xf32>
    %cst_98 = arith.constant dense<0xFF800000> : vector<8xf32>
    %214 = vector.multi_reduction <maximumf>, %213, %cst_98 [1] : vector<8x8xf32> to vector<8xf32>
    %215 = vector.shape_cast %214 : vector<8xf32> to vector<8x1xf32>
    %216 = vector.broadcast %215 : vector<8x1xf32> to vector<8x8xf32>
    %217 = arith.subf %213, %216 : vector<8x8xf32>
    %218 = math.exp %217 : vector<8x8xf32>
    %cst_99 = arith.constant dense<0.000000e+00> : vector<8xf32>
    %219 = vector.multi_reduction <add>, %218, %cst_99 [1] : vector<8x8xf32> to vector<8xf32>
    %220 = vector.shape_cast %219 : vector<8xf32> to vector<8x1xf32>
    %221 = tpu.reciprocal %220 {approx = true} : vector<8x1xf32> -> vector<8x1xf32>
    %222 = vector.broadcast %221 : vector<8x1xf32> to vector<8x8xf32>
    %223 = arith.mulf %218, %222 : vector<8x8xf32>
    %cst_100 = arith.constant dense<0.000000e+00> : vector<8x8xf32>
    %224 = tpu.matmul %223, %210, %cst_100 {dimension_numbers = #tpu.dot_dimension_numbers<[1], [0], [0], [1], [0, 0, 1, 1], [], []>} : vector<8x8xf32>, vector<8x8xf32>, vector<8x8xf32> -> vector<8x8xf32>
    %225 = vector.extract_strided_slice %205 {offsets = [0, 8], sizes = [8, 8], strides = [1, 1]} : vector<16x16xf32> to vector<8x8xf32>
    %226 = vector.extract_strided_slice %206 {offsets = [0, 8], sizes = [8, 8], strides = [1, 1]} : vector<16x16xf32> to vector<8x8xf32>
    %227 = vector.extract_strided_slice %207 {offsets = [0, 8], sizes = [8, 8], strides = [1, 1]} : vector<16x16xf32> to vector<8x8xf32>
    %cst_101 = arith.constant dense<0.000000e+00> : vector<8x8xf32>
    %228 = tpu.matmul %225, %226, %cst_101 {dimension_numbers = #tpu.dot_dimension_numbers<[1], [1], [0], [0], [0, 0, 1, 0], [], []>} : vector<8x8xf32>, vector<8x8xf32>, vector<8x8xf32> -> vector<8x8xf32>
    %cst_102 = arith.constant 0.353553385 : f32
    %229 = vector.broadcast %cst_102 : f32 to vector<8x8xf32>
    %230 = arith.mulf %228, %229 : vector<8x8xf32>
    %cst_103 = arith.constant dense<0xFF800000> : vector<8xf32>
    %231 = vector.multi_reduction <maximumf>, %230, %cst_103 [1] : vector<8x8xf32> to vector<8xf32>
    %232 = vector.shape_cast %231 : vector<8xf32> to vector<8x1xf32>
    %233 = vector.broadcast %232 : vector<8x1xf32> to vector<8x8xf32>
    %234 = arith.subf %230, %233 : vector<8x8xf32>
    %235 = math.exp %234 : vector<8x8xf32>
    %cst_104 = arith.constant dense<0.000000e+00> : vector<8xf32>
    %236 = vector.multi_reduction <add>, %235, %cst_104 [1] : vector<8x8xf32> to vector<8xf32>
    %237 = vector.shape_cast %236 : vector<8xf32> to vector<8x1xf32>
    %238 = tpu.reciprocal %237 {approx = true} : vector<8x1xf32> -> vector<8x1xf32>
    %239 = vector.broadcast %238 : vector<8x1xf32> to vector<8x8xf32>
    %240 = arith.mulf %235, %239 : vector<8x8xf32>
    %cst_105 = arith.constant dense<0.000000e+00> : vector<8x8xf32>
    %241 = tpu.matmul %240, %227, %cst_105 {dimension_numbers = #tpu.dot_dimension_numbers<[1], [0], [0], [1], [0, 0, 1, 1], [], []>} : vector<8x8xf32>, vector<8x8xf32>, vector<8x8xf32> -> vector<8x8xf32>
    %242 = tpu.concatenate %224, %241 in 1 : vector<8x8xf32>, vector<8x8xf32> -> vector<8x16xf32>
    %243 = vector.extract_strided_slice %205 {offsets = [8, 0], sizes = [8, 8], strides = [1, 1]} : vector<16x16xf32> to vector<8x8xf32>
    %244 = vector.extract_strided_slice %206 {offsets = [8, 0], sizes = [8, 8], strides = [1, 1]} : vector<16x16xf32> to vector<8x8xf32>
    %245 = vector.extract_strided_slice %207 {offsets = [8, 0], sizes = [8, 8], strides = [1, 1]} : vector<16x16xf32> to vector<8x8xf32>
    %cst_106 = arith.constant dense<0.000000e+00> : vector<8x8xf32>
    %246 = tpu.matmul %243, %244, %cst_106 {dimension_numbers = #tpu.dot_dimension_numbers<[1], [1], [0], [0], [0, 0, 1, 0], [], []>} : vector<8x8xf32>, vector<8x8xf32>, vector<8x8xf32> -> vector<8x8xf32>
    %cst_107 = arith.constant 0.353553385 : f32
    %247 = vector.broadcast %cst_107 : f32 to vector<8x8xf32>
    %248 = arith.mulf %246, %247 : vector<8x8xf32>
    %cst_108 = arith.constant dense<0xFF800000> : vector<8xf32>
    %249 = vector.multi_reduction <maximumf>, %248, %cst_108 [1] : vector<8x8xf32> to vector<8xf32>
    %250 = vector.shape_cast %249 : vector<8xf32> to vector<8x1xf32>
    %251 = vector.broadcast %250 : vector<8x1xf32> to vector<8x8xf32>
    %252 = arith.subf %248, %251 : vector<8x8xf32>
    %253 = math.exp %252 : vector<8x8xf32>
    %cst_109 = arith.constant dense<0.000000e+00> : vector<8xf32>
    %254 = vector.multi_reduction <add>, %253, %cst_109 [1] : vector<8x8xf32> to vector<8xf32>
    %255 = vector.shape_cast %254 : vector<8xf32> to vector<8x1xf32>
    %256 = tpu.reciprocal %255 {approx = true} : vector<8x1xf32> -> vector<8x1xf32>
    %257 = vector.broadcast %256 : vector<8x1xf32> to vector<8x8xf32>
    %258 = arith.mulf %253, %257 : vector<8x8xf32>
    %cst_110 = arith.constant dense<0.000000e+00> : vector<8x8xf32>
    %259 = tpu.matmul %258, %245, %cst_110 {dimension_numbers = #tpu.dot_dimension_numbers<[1], [0], [0], [1], [0, 0, 1, 1], [], []>} : vector<8x8xf32>, vector<8x8xf32>, vector<8x8xf32> -> vector<8x8xf32>
    %260 = vector.extract_strided_slice %205 {offsets = [8, 8], sizes = [8, 8], strides = [1, 1]} : vector<16x16xf32> to vector<8x8xf32>
    %261 = vector.extract_strided_slice %206 {offsets = [8, 8], sizes = [8, 8], strides = [1, 1]} : vector<16x16xf32> to vector<8x8xf32>
    %262 = vector.extract_strided_slice %207 {offsets = [8, 8], sizes = [8, 8], strides = [1, 1]} : vector<16x16xf32> to vector<8x8xf32>
    %cst_111 = arith.constant dense<0.000000e+00> : vector<8x8xf32>
    %263 = tpu.matmul %260, %261, %cst_111 {dimension_numbers = #tpu.dot_dimension_numbers<[1], [1], [0], [0], [0, 0, 1, 0], [], []>} : vector<8x8xf32>, vector<8x8xf32>, vector<8x8xf32> -> vector<8x8xf32>
    %cst_112 = arith.constant 0.353553385 : f32
    %264 = vector.broadcast %cst_112 : f32 to vector<8x8xf32>
    %265 = arith.mulf %263, %264 : vector<8x8xf32>
    %cst_113 = arith.constant dense<0xFF800000> : vector<8xf32>
    %266 = vector.multi_reduction <maximumf>, %265, %cst_113 [1] : vector<8x8xf32> to vector<8xf32>
    %267 = vector.shape_cast %266 : vector<8xf32> to vector<8x1xf32>
    %268 = vector.broadcast %267 : vector<8x1xf32> to vector<8x8xf32>
    %269 = arith.subf %265, %268 : vector<8x8xf32>
    %270 = math.exp %269 : vector<8x8xf32>
    %cst_114 = arith.constant dense<0.000000e+00> : vector<8xf32>
    %271 = vector.multi_reduction <add>, %270, %cst_114 [1] : vector<8x8xf32> to vector<8xf32>
    %272 = vector.shape_cast %271 : vector<8xf32> to vector<8x1xf32>
    %273 = tpu.reciprocal %272 {approx = true} : vector<8x1xf32> -> vector<8x1xf32>
    %274 = vector.broadcast %273 : vector<8x1xf32> to vector<8x8xf32>
    %275 = arith.mulf %270, %274 : vector<8x8xf32>
    %cst_115 = arith.constant dense<0.000000e+00> : vector<8x8xf32>
    %276 = tpu.matmul %275, %262, %cst_115 {dimension_numbers = #tpu.dot_dimension_numbers<[1], [0], [0], [1], [0, 0, 1, 1], [], []>} : vector<8x8xf32>, vector<8x8xf32>, vector<8x8xf32> -> vector<8x8xf32>
    %277 = tpu.concatenate %259, %276 in 1 : vector<8x8xf32>, vector<8x8xf32> -> vector<8x16xf32>
    %278 = tpu.concatenate %242, %277 in 0 : vector<8x16xf32>, vector<8x16xf32> -> vector<16x16xf32>
    %c1_116 = arith.constant 1 : index
    %c0_117 = arith.constant 0 : index
    %c0_118 = arith.constant 0 : index
    %279 = vector.load %arg6[%c1_116, %c0_117, %c0_118] : memref<2x16x16xf32, #tpu.memory_space<vmem>>, vector<1x16x16xf32>
    %280 = vector.shape_cast %279 : vector<1x16x16xf32> to vector<16x16xf32>
    %cst_119 = arith.constant dense<0.000000e+00> : vector<16x16xf32>
    %281 = tpu.matmul %278, %280, %cst_119 {dimension_numbers = #tpu.dot_dimension_numbers<[1], [0], [0], [1], [0, 0, 1, 1], [], []>} : vector<16x16xf32>, vector<16x16xf32>, vector<16x16xf32> -> vector<16x16xf32>
    %c1_120 = arith.constant 1 : index
    %c0_121 = arith.constant 0 : index
    %c0_122 = arith.constant 0 : index
    %282 = vector.load %arg7[%c1_120, %c0_121, %c0_122] : memref<2x1x16xf32, #tpu.memory_space<vmem>>, vector<1x1x16xf32>
    %283 = vector.shape_cast %282 : vector<1x1x16xf32> to vector<1x16xf32>
    %284 = vector.broadcast %283 : vector<1x16xf32> to vector<16x16xf32>
    %285 = arith.addf %281, %284 : vector<16x16xf32>
    %286 = arith.addf %285, %197 : vector<16x16xf32>
    %c1_123 = arith.constant 1 : index
    %c0_124 = arith.constant 0 : index
    %c0_125 = arith.constant 0 : index
    %287 = vector.load %arg8[%c1_123, %c0_124, %c0_125] : memref<2x1x16xf32, #tpu.memory_space<vmem>>, vector<1x1x16xf32>
    %288 = vector.shape_cast %287 : vector<1x1x16xf32> to vector<1x16xf32>
    %c1_126 = arith.constant 1 : index
    %c0_127 = arith.constant 0 : index
    %c0_128 = arith.constant 0 : index
    %289 = vector.load %arg9[%c1_126, %c0_127, %c0_128] : memref<2x1x16xf32, #tpu.memory_space<vmem>>, vector<1x1x16xf32>
    %290 = vector.shape_cast %289 : vector<1x1x16xf32> to vector<1x16xf32>
    %cst_129 = arith.constant dense<0.000000e+00> : vector<16xf32>
    %291 = vector.multi_reduction <add>, %286, %cst_129 [1] : vector<16x16xf32> to vector<16xf32>
    %292 = vector.shape_cast %291 : vector<16xf32> to vector<16x1xf32>
    %cst_130 = arith.constant 1.600000e+01 : f32
    %293 = vector.broadcast %cst_130 : f32 to vector<16x1xf32>
    %294 = arith.divf %292, %293 : vector<16x1xf32>
    %295 = vector.broadcast %294 : vector<16x1xf32> to vector<16x16xf32>
    %296 = arith.subf %286, %295 : vector<16x16xf32>
    %297 = arith.mulf %296, %296 : vector<16x16xf32>
    %cst_131 = arith.constant dense<0.000000e+00> : vector<16xf32>
    %298 = vector.multi_reduction <add>, %297, %cst_131 [1] : vector<16x16xf32> to vector<16xf32>
    %299 = vector.shape_cast %298 : vector<16xf32> to vector<16x1xf32>
    %cst_132 = arith.constant 1.600000e+01 : f32
    %300 = vector.broadcast %cst_132 : f32 to vector<16x1xf32>
    %301 = arith.divf %299, %300 : vector<16x1xf32>
    %cst_133 = arith.constant 9.99999996E-13 : f32
    %302 = vector.broadcast %cst_133 : f32 to vector<16x1xf32>
    %303 = arith.addf %301, %302 : vector<16x1xf32>
    %304 = math.rsqrt %303 : vector<16x1xf32>
    %305 = vector.broadcast %304 : vector<16x1xf32> to vector<16x16xf32>
    %306 = arith.mulf %296, %305 : vector<16x16xf32>
    %307 = vector.broadcast %288 : vector<1x16xf32> to vector<16x16xf32>
    %308 = arith.mulf %306, %307 : vector<16x16xf32>
    %309 = vector.broadcast %290 : vector<1x16xf32> to vector<16x16xf32>
    %310 = arith.addf %308, %309 : vector<16x16xf32>
    %c1_134 = arith.constant 1 : index
    %c0_135 = arith.constant 0 : index
    %c0_136 = arith.constant 0 : index
    %311 = vector.load %arg10[%c1_134, %c0_135, %c0_136] : memref<2x16x64xf32, #tpu.memory_space<vmem>>, vector<1x16x64xf32>
    %312 = vector.shape_cast %311 : vector<1x16x64xf32> to vector<16x64xf32>
    %cst_137 = arith.constant dense<0.000000e+00> : vector<16x64xf32>
    %313 = tpu.matmul %310, %312, %cst_137 {dimension_numbers = #tpu.dot_dimension_numbers<[1], [0], [0], [1], [0, 0, 1, 1], [], []>} : vector<16x16xf32>, vector<16x64xf32>, vector<16x64xf32> -> vector<16x64xf32>
    %c1_138 = arith.constant 1 : index
    %c0_139 = arith.constant 0 : index
    %c0_140 = arith.constant 0 : index
    %314 = vector.load %arg11[%c1_138, %c0_139, %c0_140] : memref<2x1x64xf32, #tpu.memory_space<vmem>>, vector<1x1x64xf32>
    %315 = vector.shape_cast %314 : vector<1x1x64xf32> to vector<1x64xf32>
    %316 = vector.broadcast %315 : vector<1x64xf32> to vector<16x64xf32>
    %317 = arith.addf %313, %316 : vector<16x64xf32>
    %cst_141 = arith.constant 5.000000e-01 : f32
    %318 = vector.broadcast %cst_141 : f32 to vector<16x64xf32>
    %319 = arith.mulf %318, %317 : vector<16x64xf32>
    %cst_142 = arith.constant 0.707106769 : f32
    %320 = vector.broadcast %cst_142 : f32 to vector<16x64xf32>
    %321 = arith.mulf %317, %320 : vector<16x64xf32>
    %cst_143 = arith.constant 0.000000e+00 : f32
    %322 = vector.broadcast %cst_143 : f32 to vector<16x64xf32>
    %323 = arith.cmpf oge, %321, %322 : vector<16x64xf32>
    %cst_144 = arith.constant 1.000000e+00 : f32
    %cst_145 = arith.constant -1.000000e+00 : f32
    %324 = vector.broadcast %cst_144 : f32 to vector<16x64xf32>
    %325 = vector.broadcast %cst_145 : f32 to vector<16x64xf32>
    %326 = arith.select %323, %324, %325 : vector<16x64xi1>, vector<16x64xf32>
    %327 = math.absf %321 : vector<16x64xf32>
    %cst_146 = arith.constant 0.327591091 : f32
    %328 = vector.broadcast %cst_146 : f32 to vector<16x64xf32>
    %329 = arith.mulf %328, %327 : vector<16x64xf32>
    %cst_147 = arith.constant 1.000000e+00 : f32
    %330 = vector.broadcast %cst_147 : f32 to vector<16x64xf32>
    %331 = arith.addf %330, %329 : vector<16x64xf32>
    %332 = tpu.reciprocal %331 {approx = true} : vector<16x64xf32> -> vector<16x64xf32>
    %cst_148 = arith.constant 1.06140542 : f32
    %333 = vector.broadcast %cst_148 : f32 to vector<16x64xf32>
    %334 = arith.mulf %333, %332 : vector<16x64xf32>
    %cst_149 = arith.constant -1.45315206 : f32
    %335 = vector.broadcast %cst_149 : f32 to vector<16x64xf32>
    %336 = arith.addf %334, %335 : vector<16x64xf32>
    %337 = arith.mulf %336, %332 : vector<16x64xf32>
    %cst_150 = arith.constant 1.42141378 : f32
    %338 = vector.broadcast %cst_150 : f32 to vector<16x64xf32>
    %339 = arith.addf %337, %338 : vector<16x64xf32>
    %340 = arith.mulf %339, %332 : vector<16x64xf32>
    %cst_151 = arith.constant -0.284496725 : f32
    %341 = vector.broadcast %cst_151 : f32 to vector<16x64xf32>
    %342 = arith.addf %340, %341 : vector<16x64xf32>
    %343 = arith.mulf %342, %332 : vector<16x64xf32>
    %cst_152 = arith.constant 0.254829586 : f32
    %344 = vector.broadcast %cst_152 : f32 to vector<16x64xf32>
    %345 = arith.addf %343, %344 : vector<16x64xf32>
    %346 = arith.mulf %345, %332 : vector<16x64xf32>
    %cst_153 = arith.constant 0.000000e+00 : f32
    %347 = vector.broadcast %cst_153 : f32 to vector<16x64xf32>
    %348 = arith.subf %347, %327 : vector<16x64xf32>
    %349 = arith.mulf %348, %327 : vector<16x64xf32>
    %350 = math.exp %349 : vector<16x64xf32>
    %351 = arith.mulf %346, %350 : vector<16x64xf32>
    %cst_154 = arith.constant 1.000000e+00 : f32
    %352 = vector.broadcast %cst_154 : f32 to vector<16x64xf32>
    %353 = arith.subf %352, %351 : vector<16x64xf32>
    %354 = arith.mulf %326, %353 : vector<16x64xf32>
    %cst_155 = arith.constant 1.000000e+00 : f32
    %355 = vector.broadcast %cst_155 : f32 to vector<16x64xf32>
    %356 = arith.addf %355, %354 : vector<16x64xf32>
    %357 = arith.mulf %319, %356 : vector<16x64xf32>
    %c1_156 = arith.constant 1 : index
    %c0_157 = arith.constant 0 : index
    %c0_158 = arith.constant 0 : index
    %358 = vector.load %arg12[%c1_156, %c0_157, %c0_158] : memref<2x64x16xf32, #tpu.memory_space<vmem>>, vector<1x64x16xf32>
    %359 = vector.shape_cast %358 : vector<1x64x16xf32> to vector<64x16xf32>
    %cst_159 = arith.constant dense<0.000000e+00> : vector<16x16xf32>
    %360 = tpu.matmul %357, %359, %cst_159 {dimension_numbers = #tpu.dot_dimension_numbers<[1], [0], [0], [1], [0, 0, 1, 1], [], []>} : vector<16x64xf32>, vector<64x16xf32>, vector<16x16xf32> -> vector<16x16xf32>
    %c1_160 = arith.constant 1 : index
    %c0_161 = arith.constant 0 : index
    %c0_162 = arith.constant 0 : index
    %361 = vector.load %arg13[%c1_160, %c0_161, %c0_162] : memref<2x1x16xf32, #tpu.memory_space<vmem>>, vector<1x1x16xf32>
    %362 = vector.shape_cast %361 : vector<1x1x16xf32> to vector<1x16xf32>
    %363 = vector.broadcast %362 : vector<1x16xf32> to vector<16x16xf32>
    %364 = arith.addf %360, %363 : vector<16x16xf32>
    %365 = arith.addf %364, %310 : vector<16x16xf32>
    %c1_163 = arith.constant 1 : index
    %c0_164 = arith.constant 0 : index
    %c0_165 = arith.constant 0 : index
    %366 = vector.load %arg14[%c1_163, %c0_164, %c0_165] : memref<2x1x16xf32, #tpu.memory_space<vmem>>, vector<1x1x16xf32>
    %367 = vector.shape_cast %366 : vector<1x1x16xf32> to vector<1x16xf32>
    %c1_166 = arith.constant 1 : index
    %c0_167 = arith.constant 0 : index
    %c0_168 = arith.constant 0 : index
    %368 = vector.load %arg15[%c1_166, %c0_167, %c0_168] : memref<2x1x16xf32, #tpu.memory_space<vmem>>, vector<1x1x16xf32>
    %369 = vector.shape_cast %368 : vector<1x1x16xf32> to vector<1x16xf32>
    %cst_169 = arith.constant dense<0.000000e+00> : vector<16xf32>
    %370 = vector.multi_reduction <add>, %365, %cst_169 [1] : vector<16x16xf32> to vector<16xf32>
    %371 = vector.shape_cast %370 : vector<16xf32> to vector<16x1xf32>
    %cst_170 = arith.constant 1.600000e+01 : f32
    %372 = vector.broadcast %cst_170 : f32 to vector<16x1xf32>
    %373 = arith.divf %371, %372 : vector<16x1xf32>
    %374 = vector.broadcast %373 : vector<16x1xf32> to vector<16x16xf32>
    %375 = arith.subf %365, %374 : vector<16x16xf32>
    %376 = arith.mulf %375, %375 : vector<16x16xf32>
    %cst_171 = arith.constant dense<0.000000e+00> : vector<16xf32>
    %377 = vector.multi_reduction <add>, %376, %cst_171 [1] : vector<16x16xf32> to vector<16xf32>
    %378 = vector.shape_cast %377 : vector<16xf32> to vector<16x1xf32>
    %cst_172 = arith.constant 1.600000e+01 : f32
    %379 = vector.broadcast %cst_172 : f32 to vector<16x1xf32>
    %380 = arith.divf %378, %379 : vector<16x1xf32>
    %cst_173 = arith.constant 9.99999996E-13 : f32
    %381 = vector.broadcast %cst_173 : f32 to vector<16x1xf32>
    %382 = arith.addf %380, %381 : vector<16x1xf32>
    %383 = math.rsqrt %382 : vector<16x1xf32>
    %384 = vector.broadcast %383 : vector<16x1xf32> to vector<16x16xf32>
    %385 = arith.mulf %375, %384 : vector<16x16xf32>
    %386 = vector.broadcast %367 : vector<1x16xf32> to vector<16x16xf32>
    %387 = arith.mulf %385, %386 : vector<16x16xf32>
    %388 = vector.broadcast %369 : vector<1x16xf32> to vector<16x16xf32>
    %389 = arith.addf %387, %388 : vector<16x16xf32>
    %c0_174 = arith.constant 0 : index
    %c0_175 = arith.constant 0 : index
    %390 = vector.load %arg16[%c0_174, %c0_175] : memref<16x32xf32, #tpu.memory_space<vmem>>, vector<16x32xf32>
    %cst_176 = arith.constant dense<0.000000e+00> : vector<16x32xf32>
    %391 = tpu.matmul %389, %390, %cst_176 {dimension_numbers = #tpu.dot_dimension_numbers<[1], [0], [0], [1], [0, 0, 1, 1], [], []>} : vector<16x16xf32>, vector<16x32xf32>, vector<16x32xf32> -> vector<16x32xf32>
    %c0_177 = arith.constant 0 : index
    %c0_178 = arith.constant 0 : index
    %392 = vector.load %arg17[%c0_177, %c0_178] : memref<1x32xf32, #tpu.memory_space<vmem>>, vector<1x32xf32>
    %393 = vector.broadcast %392 : vector<1x32xf32> to vector<16x32xf32>
    %394 = arith.addf %391, %393 : vector<16x32xf32>
    %395 = arith.addf %0, %394 : vector<16x32xf32>
    %c0_179 = arith.constant 0 : index
    %c0_180 = arith.constant 0 : index
    %396 = vector.load %arg18[%c0_179, %c0_180] : memref<16x32xf32, #tpu.memory_space<vmem>>, vector<16x32xf32>
    tpu.vector_store %arg18[%c0_179, %c0_180], %395 {strides = array<i32>} : memref<16x32xf32, #tpu.memory_space<vmem>>, vector<16x32xf32>,
    return
  }
  func.func @transform_0(%arg0: i32) -> (i32, i32) {
    %c0_i32 = arith.constant 0 : i32
    %c0_i32_0 = arith.constant 0 : i32
    return %arg0, %c0_i32 : i32, i32
  }
  func.func @transform_1(%arg0: i32) -> (i32, i32) {
    %c0_i32 = arith.constant 0 : i32
    %c0_i32_0 = arith.constant 0 : i32
    %c0_i32_1 = arith.constant 0 : i32
    return %c0_i32, %c0_i32_0 : i32, i32
  }
  func.func @transform_2(%arg0: i32) -> (i32, i32) {
    %c0_i32 = arith.constant 0 : i32
    %c0_i32_0 = arith.constant 0 : i32
    %c0_i32_1 = arith.constant 0 : i32
    return %c0_i32, %c0_i32_0 : i32, i32
  }
  func.func @transform_3(%arg0: i32) -> (i32, i32, i32) {
    %c0_i32 = arith.constant 0 : i32
    %c0_i32_0 = arith.constant 0 : i32
    %c0_i32_1 = arith.constant 0 : i32
    %c0_i32_2 = arith.constant 0 : i32
    return %c0_i32, %c0_i32_0, %c0_i32_1 : i32, i32, i32
  }
  func.func @transform_4(%arg0: i32) -> (i32, i32, i32) {
    %c0_i32 = arith.constant 0 : i32
    %c0_i32_0 = arith.constant 0 : i32
    %c0_i32_1 = arith.constant 0 : i32
    %c0_i32_2 = arith.constant 0 : i32
    return %c0_i32, %c0_i32_0, %c0_i32_1 : i32, i32, i32
  }
  func.func @transform_5(%arg0: i32) -> (i32, i32, i32) {
    %c0_i32 = arith.constant 0 : i32
    %c0_i32_0 = arith.constant 0 : i32
    %c0_i32_1 = arith.constant 0 : i32
    %c0_i32_2 = arith.constant 0 : i32
    return %c0_i32, %c0_i32_0, %c0_i32_1 : i32, i32, i32
  }
  func.func @transform_6(%arg0: i32) -> (i32, i32, i32) {
    %c0_i32 = arith.constant 0 : i32
    %c0_i32_0 = arith.constant 0 : i32
    %c0_i32_1 = arith.constant 0 : i32
    %c0_i32_2 = arith.constant 0 : i32
    return %c0_i32, %c0_i32_0, %c0_i32_1 : i32, i32, i32
  }
  func.func @transform_7(%arg0: i32) -> (i32, i32, i32) {
    %c0_i32 = arith.constant 0 : i32
    %c0_i32_0 = arith.constant 0 : i32
    %c0_i32_1 = arith.constant 0 : i32
    %c0_i32_2 = arith.constant 0 : i32
    return %c0_i32, %c0_i32_0, %c0_i32_1 : i32, i32, i32
  }
  func.func @transform_8(%arg0: i32) -> (i32, i32, i32) {
    %c0_i32 = arith.constant 0 : i32
    %c0_i32_0 = arith.constant 0 : i32
    %c0_i32_1 = arith.constant 0 : i32
    %c0_i32_2 = arith.constant 0 : i32
    return %c0_i32, %c0_i32_0, %c0_i32_1 : i32, i32, i32
  }
  func.func @transform_9(%arg0: i32) -> (i32, i32, i32) {
    %c0_i32 = arith.constant 0 : i32
    %c0_i32_0 = arith.constant 0 : i32
    %c0_i32_1 = arith.constant 0 : i32
    %c0_i32_2 = arith.constant 0 : i32
    return %c0_i32, %c0_i32_0, %c0_i32_1 : i32, i32, i32
  }
  func.func @transform_10(%arg0: i32) -> (i32, i32, i32) {
    %c0_i32 = arith.constant 0 : i32
    %c0_i32_0 = arith.constant 0 : i32
    %c0_i32_1 = arith.constant 0 : i32
    %c0_i32_2 = arith.constant 0 : i32
    return %c0_i32, %c0_i32_0, %c0_i32_1 : i32, i32, i32
  }
  func.func @transform_11(%arg0: i32) -> (i32, i32, i32) {
    %c0_i32 = arith.constant 0 : i32
    %c0_i32_0 = arith.constant 0 : i32
    %c0_i32_1 = arith.constant 0 : i32
    %c0_i32_2 = arith.constant 0 : i32
    return %c0_i32, %c0_i32_0, %c0_i32_1 : i32, i32, i32
  }
  func.func @transform_12(%arg0: i32) -> (i32, i32, i32) {
    %c0_i32 = arith.constant 0 : i32
    %c0_i32_0 = arith.constant 0 : i32
    %c0_i32_1 = arith.constant 0 : i32
    %c0_i32_2 = arith.constant 0 : i32
    return %c0_i32, %c0_i32_0, %c0_i32_1 : i32, i32, i32
  }
  func.func @transform_13(%arg0: i32) -> (i32, i32, i32) {
    %c0_i32 = arith.constant 0 : i32
    %c0_i32_0 = arith.constant 0 : i32
    %c0_i32_1 = arith.constant 0 : i32
    %c0_i32_2 = arith.constant 0 : i32
    return %c0_i32, %c0_i32_0, %c0_i32_1 : i32, i32, i32
  }
  func.func @transform_14(%arg0: i32) -> (i32, i32, i32) {
    %c0_i32 = arith.constant 0 : i32
    %c0_i32_0 = arith.constant 0 : i32
    %c0_i32_1 = arith.constant 0 : i32
    %c0_i32_2 = arith.constant 0 : i32
    return %c0_i32, %c0_i32_0, %c0_i32_1 : i32, i32, i32
  }
  func.func @transform_15(%arg0: i32) -> (i32, i32) {
    %c0_i32 = arith.constant 0 : i32
    %c0_i32_0 = arith.constant 0 : i32
    %c0_i32_1 = arith.constant 0 : i32
    return %c0_i32, %c0_i32_0 : i32, i32
  }
  func.func @transform_16(%arg0: i32) -> (i32, i32) {
    %c0_i32 = arith.constant 0 : i32
    %c0_i32_0 = arith.constant 0 : i32
    %c0_i32_1 = arith.constant 0 : i32
    return %c0_i32, %c0_i32_0 : i32, i32
  }
  func.func @transform_17(%arg0: i32) -> (i32, i32) {
    %c0_i32 = arith.constant 0 : i32
    %c0_i32_0 = arith.constant 0 : i32
    return %arg0, %c0_i32 : i32, i32
  }
}

</mosaic_0001>

<bundles_post_ra>
// kernel: tpu_custom_call.1
= control target key start
LH: loop header
LB: loop body
LE: loop exit
PB: predicated region body
PF: predicated region fallthrough
CT: control target
= control target key end

     0   :  { %s2008_s0 = inlined_call_operand.vmem [shape: f32[16,32], index: 0, kind: input, shape index: {}]   ;;  %s2009_s1 = inlined_call_operand.vmem [shape: f32[32,16], index: 1, kind: input, shape index: {}]   ;;  %s2010_s2 = inlined_call_operand.vmem [shape: f32[1,16], index: 2, kind: input, shape index: {}]   ;;  %s2011_s3 = inlined_call_operand.vmem [shape: f32[2,16,48], index: 3, kind: input, shape index: {}]   ;;  %s2012_s4 = inlined_call_operand.vmem [shape: f32[2,1,48], index: 4, kind: input, shape index: {}]   ;;  %s2013_s5 = inlined_call_operand.vmem [shape: f32[2,16,16], index: 5, kind: input, shape index: {}]   ;;  %s2014_s6 = inlined_call_operand.vmem [shape: f32[2,1,16], index: 6, kind: input, shape index: {}]   ;;  %s2015_s7 = inlined_call_operand.vmem [shape: f32[2,1,16], index: 7, kind: input, shape index: {}]   ;;  %s2016_s8 = inlined_call_operand.vmem [shape: f32[2,1,16], index: 8, kind: input, shape index: {}]   ;;  %s2017_s9 = inlined_call_operand.vmem [shape: f32[2,16,64], index: 9, kind: input, shape index: {}]   ;;  %s2018_s10 = inlined_call_operand.vmem [shape: f32[2,1,64], index: 10, kind: input, shape index: {}]   ;;  %s2019_s11 = inlined_call_operand.vmem [shape: f32[2,64,16], index: 11, kind: input, shape index: {}]   ;;  %s2020_s12 = inlined_call_operand.vmem [shape: f32[2,1,16], index: 12, kind: input, shape index: {}]   ;;  %s2021_s13 = inlined_call_operand.vmem [shape: f32[2,1,16], index: 13, kind: input, shape index: {}]   ;;  %s2022_s14 = inlined_call_operand.vmem [shape: f32[2,1,16], index: 14, kind: input, shape index: {}]   ;;  %s2023_s15 = inlined_call_operand.vmem [shape: f32[16,32], index: 15, kind: input, shape index: {}]   ;;  %s2024_s16 = inlined_call_operand.vmem [shape: f32[1,32], index: 16, kind: input, shape index: {}]   ;;  %s2025_s17 = inlined_call_operand.hbm [shape: f32[16,32], index: 17, kind: output, shape index: {}]  }
   0x1   :  { %2028 = sst [smem:[#allocation5_spill]] %s2008_s0 }
   0x2   :  { %2029 = sst [smem:[#allocation6_spill]] %s2009_s1 }
   0x3   :  { %s2030_s26 = sld [smem:[#allocation6_spill]]  ;;  %vm67_vm0 = vcmask 261120  }
   0x4   :  { %s2031_s20 = sld [smem:[#allocation5_spill]] }
   0x9   :  { %v62_v0 = vld [vmem:[%s2030_s26 + $0x18] sm:$0xff]  ;;  %v61_v1 = vld [vmem:[%s2030_s26 + $0x10] sm:$0xff]  ;;  %v60_v2 = vld [vmem:[%s2030_s26 + $0x8] sm:$0xff] }
   0xa   :  { %86 = vmatpush.msra.mxu0 %v62_v0  ;;  %v59_v3 = vld [vmem:[%s2030_s26] sm:$0xff] }
   0xb   :  { %v57_v4 = vld [vmem:[%s2031_s20] sm:$0xff] }
   0xc   :  { %87 = vmatpush.msra.mxu0 %v61_v1 }
   0xe   :  { %88 = vmatpush.msra.mxu0 %v60_v2 }
  0x10   :  { %89 = vmatpush.msra.mxu0 %v59_v3 }
  0x11   :  { %1348 = vmatmul.msk.f32.vlgmr.msra.gmra.mxu0 %vm67_vm0, %v57_v4 }
  0x12   :  { %22 = vsyncpa [#allocation3], 0  ;;  %v98_v5 = vld [vmem:[%s2011_s3 + $0x8] sm:$0xff]  ;;  %v97_v6 = vld [vmem:[%s2011_s3] sm:$0xff]  ;;  %vm103_vm1 = vcmask 130048   ;;  %s1536_s29 = smov 104  }
  0x13   :  { %124 = vmatpush.msra.mxu1 %v98_v5  ;;  %v1424_v7 = vld [vmem:[%s2010_s2] ss:$0 sm:$0xff]  ;;  %s1537_s0 = smov 112   ;;  %s1538_s2 = smov 120   ;;  %vm136_vm2 = vcmask 64512   ;;  %v58_v14 = vld [vmem:[%s2031_s20 + $0x8] sm:$0xff] }
  0x14   :  { %v1425_v10 = vld [vmem:[%s2012_s4] ss:$0 sm:$0xff]  ;;  %s1539_s19 = smov 96   ;;  %s1540_s1 = smov 88   ;;  %v407_v53 = vld [vmem:[%s2013_s5 + $0x8] sm:$0xff]  ;;  %vm605_vm8 = vcmask 523264  }
  0x15   :  { %125 = vmatpush.msra.mxu1 %v97_v6  ;;  %s1541_s21 = smov 8   ;;  %v406_v62 = vld [vmem:[%s2013_s5] sm:$0xff] }
  0x19   :  { %1349 = vmatmul.msk.f32.gmra.mxu0 %vm67_vm0, %v58_v14 }
  0x8e   :  { %v91_v8 = vpop.f32.mrf.mxu0 }
  0x8f   :  { %v1661_v9 = vadd.f32 %v1424_v7, %v91_v8 }
  0x91   :  { %1350 = vmatmul.msk.f32.vlgmr.msra.gmra.mxu1 %vm103_vm1, %v1661_v9 }
  0x96   :  { %v94_v21 = vpop.f32.mrf.mxu0 }
  0x97   :  { %v1678_v22 = vadd.f32 %v1424_v7, %v94_v21 }
  0x99   :  { %1351 = vmatmul.msk.f32.gmra.mxu1 %vm103_vm1, %v1678_v22 }
 0x10e   :  { %v127_v11 = vpop.f32.mrf.mxu1 }
 0x10f   :  { %v128_v12 = vadd.f32 %v1425_v10, %v127_v11  ;;  %v1725_v11 = vld [vmem:[%s2014_s6] ss:$0 sm:$0xff] }
 0x111   :  { %201 = vrot.lane.b32.xlu2 %v128_v12, %s1536_s29  ;;  %134 = vrot.lane.b32.xlu0 %v128_v12, %s1537_s0 }
 0x116   :  { %v130_v25 = vpop.f32.mrf.mxu1 }
 0x117   :  { %v1684_v26 = vadd.f32 %v1425_v10, %v130_v25 }
 0x119   :  { %199 = vrot.lane.b32.xlu2 %v128_v12, %s1538_s2 }
 0x16b   :  { %v202_v29 = vpop.permute.xlu2 %201 }
 0x173   :  { %v200_v32 = vpop.permute.xlu2 %199 }
 0x183   :  { %v135_v13 = vpop.permute.xlu0 %134 }
 0x184   :  { %1352 = vmatpush.xpose.msk.msra.mxu2 %vm136_vm2, %v135_v13 }
 0x187   :  { %1353 = vmatmul.msk.f32.vlgmr.msra.gmra.mxu2 %vm136_vm2, %v128_v12 }
 0x20a   :  { %v158_v15 = vpop.f32.mrf.mxu2 }
 0x20b   :  { %v161_v16 = vmul.f32 0.35355338, %v158_v15 }
 0x20d   :  { %v162_v17 = vsel %vm136_vm2, %v161_v16, -inf }
 0x20e   :  { %163 = vmax.xlane.f32.xlu0 %v162_v17 }
 0x222   :  { %271 = vrot.lane.b32.xlu0 %v1684_v26, %s1537_s0 }
 0x22a   :  { %337 = vrot.lane.b32.xlu0 %v1684_v26, %s1536_s29 }
 0x281   :  { %v164_v18 = vpop.xlane.xlu0 %163 }
 0x282   :  { %v165_v19 = vsub.f32 %v161_v16, %v164_v18 }
 0x284   :  { %v166_v20 = vmul.f32 1.442695, %v165_v19 }
 0x286   :  { %1442 = vpow2.f32 %v166_v20  ;;  %v1542_v20 = vmov 16.0  }
 0x28c   :  { %v1443_v23 = vpop.eup %1442 }
 0x28d   :  { %v168_v24 = vsel %vm136_vm2, %v1443_v23, 0.0 }
 0x28e   :  { %169 = vadd.xlane.f32.xlu1 %v168_v24 }
 0x294   :  { %v272_v33 = vpop.permute.xlu0 %271 }
 0x29c   :  { %v338_v47 = vpop.permute.xlu0 %337 }
 0x2a7   :  { %173 = vrot.lane.b32.xlu1 %v128_v12, %s1539_s19 }
 0x301   :  { %v170_v27 = vpop.xlane.xlu1 %169 }
 0x302   :  { %1444 = vrcp.f32 %v170_v27 }
 0x308   :  { %v1445_v28 = vpop.eup %1444 }
 0x309   :  { %v172_v31 = vmul.f32 %v1445_v28, %v1443_v23 }
 0x319   :  { %v174_v30 = vpop.permute.xlu1 %173 }
 0x31a   :  { %194 = vmatpush.msra.mxu3 %v174_v30 }
 0x31b   :  { %1354 = vmatmul.msk.f32.vlgmr.msra.gmra.mxu3 %vm136_vm2, %v172_v31 }
 0x31c   :  { %1355 = vmatpush.xpose.msk.msrb.mxu3 %vm136_vm2, %v202_v29 }
 0x320   :  { %1358 = vmatpush.xpose.msk.msra.mxu3 %vm136_vm2, %v272_v33 }
 0x323   :  { %1356 = vmatmul.msk.f32.vlgmr.msrb.gmra.mxu3 %vm136_vm2, %v200_v32 }
 0x324   :  { %432 = vmatpush.msrb.mxu3 %v407_v53  ;;  %v1764_v53 = vld [vmem:[%s2018_s10] ss:$0 sm:$0xff] }
 0x326   :  { %433 = vmatpush.msrb.mxu3 %v406_v62 }
 0x32b   :  { %1359 = vmatmul.msk.f32.vlgmr.msra.gmra.mxu3 %vm136_vm2, %v1684_v26 }
 0x39e   :  { %v196_v34 = vpop.f32.mrf.mxu3 }
 0x3a6   :  { %v224_v35 = vpop.f32.mrf.mxu3 }
 0x3a7   :  { %v227_v36 = vmul.f32 0.35355338, %v224_v35  ;;  %v506_v35 = vld [vmem:[%s2017_s9] sm:$0xff] }
 0x3a9   :  { %v228_v37 = vsel %vm136_vm2, %v227_v36, -inf }
 0x3aa   :  { %229 = vmax.xlane.f32.xlu2 %v228_v37 }
 0x3ae   :  { %v294_v41 = vpop.f32.mrf.mxu3 }
 0x3af   :  { %v297_v42 = vmul.f32 0.35355338, %v294_v41 }
 0x3b1   :  { %v298_v44 = vsel %vm136_vm2, %v297_v42, -inf }
 0x3b2   :  { %299 = vmax.xlane.f32.xlu0 %v298_v44 }
 0x3c2   :  { %239 = vrot.lane.b32.xlu2 %v128_v12, %s1540_s1 }
 0x41d   :  { %v230_v38 = vpop.xlane.xlu2 %229 }
 0x41e   :  { %v231_v39 = vsub.f32 %v227_v36, %v230_v38 }
 0x420   :  { %v232_v40 = vmul.f32 1.442695, %v231_v39 }
 0x422   :  { %1446 = vpow2.f32 %v232_v40 }
 0x425   :  { %v240_v43 = vpop.permute.xlu2 %239  ;;  %v300_v57 = vpop.xlane.xlu0 %299 }
 0x426   :  { %260 = vmatpush.msrb.mxu2 %v240_v43  ;;  %v301_v58 = vsub.f32 %v297_v42, %v300_v57  ;;  %v599_v57 = vld [vmem:[%s2019_s11 + $0x30] sm:$0xff] }
 0x428   :  { %v1447_v45 = vpop.eup %1446  ;;  %1361 = vmatpush.xpose.msk.msra.mxu2 %vm136_vm2, %v338_v47  ;;  %v302_v59 = vmul.f32 1.442695, %v301_v58 }
 0x429   :  { %v234_v46 = vsel %vm136_vm2, %v1447_v45, 0.0 }
 0x42a   :  { %235 = vadd.xlane.f32.xlu1 %v234_v46 }
 0x443   :  { %335 = vrot.lane.b32.xlu1 %v1684_v26, %s1538_s2 }
 0x49d   :  { %v236_v48 = vpop.xlane.xlu1 %235 }
 0x49e   :  { %1448 = vrcp.f32 %v236_v48  ;;  %v1751_v48 = vld [vmem:[%s2016_s8] ss:$0 sm:$0xff] }
 0x49f   :  { %1450 = vpow2.f32 %v302_v59  ;;  %v598_v59 = vld [vmem:[%s2019_s11 + $0x28] sm:$0xff] }
 0x4a4   :  { %v1449_v49 = vpop.eup %1448 }
 0x4a5   :  { %v238_v50 = vmul.f32 %v1449_v49, %v1447_v45  ;;  %v1451_v60 = vpop.eup %1450  ;;  %v1746_v45 = vld [vmem:[%s2015_s7] ss:$0 sm:$0xff] }
 0x4a6   :  { %v304_v61 = vsel %vm136_vm2, %v1451_v60, 0.0 }
 0x4a7   :  { %1357 = vmatmul.msk.f32.vlgmr.msrb.gmra.mxu2 %vm136_vm2, %v238_v50 }
 0x4b5   :  { %v336_v51 = vpop.permute.xlu1 %335 }
 0x4b6   :  { %1362 = vmatmul.msk.f32.vlgmr.msra.gmra.mxu2 %vm136_vm2, %v336_v51 }
 0x52a   :  { %v262_v52 = vpop.f32.mrf.mxu2 }
 0x52b   :  { %266 = vrot.lane.b32.xlu1 %v262_v52, %s1541_s21 }
 0x539   :  { %v360_v54 = vpop.f32.mrf.mxu2 }
 0x53a   :  { %v363_v55 = vmul.f32 0.35355338, %v360_v54  ;;  %v600_v54 = vld [vmem:[%s2019_s11 + $0x38] sm:$0xff] }
 0x53b   :  { %620 = vmatpush.msrb.mxu2 %v600_v54 }
 0x53c   :  { %v364_v56 = vsel %vm136_vm2, %v363_v55, -inf }
 0x53d   :  { %365 = vmax.xlane.f32.xlu2 %v364_v56  ;;  %621 = vmatpush.msrb.mxu2 %v599_v57 }
 0x53f   :  { %622 = vmatpush.msrb.mxu2 %v598_v59 }
 0x555   :  { %309 = vrot.lane.b32.xlu2 %v1684_v26, %s1539_s19  ;;  %305 = vadd.xlane.f32.xlu1 %v304_v61  ;;  %v597_v61 = vld [vmem:[%s2019_s11 + $0x20] sm:$0xff] }
 0x556   :  { %623 = vmatpush.msrb.mxu2 %v597_v61 }
 0x59d   :  { %v267_v63 = vpop.permute.xlu1 %266 }
 0x59e   :  { %v269_v0 = vsel %vm136_vm2, %v196_v34, %v267_v63  ;;  %v507_v34 = vld [vmem:[%s2017_s9 + $0x8] sm:$0xff]  ;;  %v596_v63 = vld [vmem:[%s2019_s11 + $0x18] sm:$0xff] }
 0x59f   :  { %1364 = vmatmul.msk.f32.vlgmr.msrb.gmra.mxu3 %vm103_vm1, %v269_v0  ;;  %624 = vmatpush.msrb.mxu2 %v596_v63 }
 0x5b0   :  { %v366_v1 = vpop.xlane.xlu2 %365 }
 0x5b1   :  { %v367_v2 = vsub.f32 %v363_v55, %v366_v1  ;;  %v595_v1 = vld [vmem:[%s2019_s11 + $0x10] sm:$0xff] }
 0x5b2   :  { %625 = vmatpush.msrb.mxu2 %v595_v1 }
 0x5b3   :  { %v368_v3 = vmul.f32 1.442695, %v367_v2 }
 0x5b5   :  { %1452 = vpow2.f32 %v368_v3 }
 0x5b8   :  { %v310_v4 = vpop.permute.xlu2 %309 }
 0x5b9   :  { %330 = vmatpush.msrb.mxu1 %v310_v4  ;;  %v594_v4 = vld [vmem:[%s2019_s11 + $0x8] sm:$0xff] }
 0x5ba   :  { %626 = vmatpush.msrb.mxu2 %v594_v4 }
 0x5bb   :  { %v1453_v5 = vpop.eup %1452 }
 0x5bc   :  { %v370_v6 = vsel %vm136_vm2, %v1453_v5, 0.0 }
 0x5bd   :  { %371 = vadd.xlane.f32.xlu0 %v370_v6 }
 0x5c8   :  { %v306_v7 = vpop.xlane.xlu1 %305 }
 0x5c9   :  { %1454 = vrcp.f32 %v306_v7 }
 0x5cf   :  { %v1455_v8 = vpop.eup %1454 }
 0x5d0   :  { %v308_v10 = vmul.f32 %v1455_v8, %v1451_v60 }
 0x5d1   :  { %375 = vrot.lane.b32.xlu0 %v1684_v26, %s1540_s1 }
 0x5d2   :  { %1360 = vmatmul.msk.f32.vlgmr.msrb.gmra.mxu1 %vm136_vm2, %v308_v10 }
 0x622   :  { %v435_v12 = vpop.f32.mrf.mxu3 }
 0x623   :  { %v436_v13 = vadd.f32 %v1725_v11, %v435_v12 }
 0x625   :  { %v441_v14 = vadd.f32 %v436_v13, %v1661_v9 }
 0x627   :  { %v445_v15 = vsel %vm103_vm1, %v441_v14, 0.0 }
 0x628   :  { %446 = vadd.xlane.f32.xlu2 %v445_v15 }
 0x630   :  { %v372_v16 = vpop.xlane.xlu0 %371 }
 0x631   :  { %1456 = vrcp.f32 %v372_v16 }
 0x632   :  { %1458 = vrcp.f32 %v1542_v20 }
 0x637   :  { %v1457_v17 = vpop.eup %1456 }
 0x638   :  { %v374_v18 = vmul.f32 %v1457_v17, %v1453_v5  ;;  %v1459_v21 = vpop.eup %1458  ;;  %v593_v5 = vld [vmem:[%s2019_s11] sm:$0xff] }
 0x639   :  { %v452_v23 = vmul.f32 16.0, %v1459_v21  ;;  %vm456_vm3 = vweird.f32 %v1459_v21  ;;  %627 = vmatpush.msrb.mxu2 %v593_v5 }
 0x63b   :  { %v453_v24 = vsub.f32 1.0, %v452_v23 }
 0x63d   :  { %v454_v25 = vmul.f32 %v1459_v21, %v453_v24 }
 0x63f   :  { %v455_v26 = vadd.f32 %v1459_v21, %v454_v25  ;;  %v1543_v25 = vmov -1.0  }
 0x641   :  { %v1731_v9 = vsel %vm456_vm3, %v1459_v21, %v455_v26 }
 0x643   :  { %v376_v19 = vpop.permute.xlu0 %375 }
 0x644   :  { %396 = vmatpush.msra.mxu1 %v376_v19 }
 0x645   :  { %1363 = vmatmul.msk.f32.vlgmr.msra.gmra.mxu1 %vm136_vm2, %v374_v18 }
 0x646   :  { %532 = vmatpush.msrb.mxu1 %v507_v34 }
 0x648   :  { %533 = vmatpush.msrb.mxu1 %v506_v35 }
 0x64f   :  { %v332_v32 = vpop.f32.mrf.mxu1 }
 0x69b   :  { %v447_v27 = vpop.xlane.xlu2 %446 }
 0x69c   :  { %v458_v28 = vmul.f32 %v1731_v9, %v447_v27 }
 0x69e   :  { %v460_v29 = vsub.f32 %v441_v14, %v458_v28 }
 0x6a0   :  { %v462_v30 = vmul.f32 %v460_v29, %v460_v29 }
 0x6a2   :  { %v464_v31 = vsel %vm103_vm1, %v462_v30, 0.0 }
 0x6a3   :  { %465 = vadd.xlane.f32.xlu1 %v464_v31 }
 0x6c2   :  { %v398_v33 = vpop.f32.mrf.mxu1 }
 0x6c3   :  { %402 = vrot.lane.b32.xlu0 %v398_v33, %s1541_s21 }
 0x716   :  { %v466_v36 = vpop.xlane.xlu1 %465 }
 0x717   :  { %v470_v37 = vmul.f32 %v466_v36, %v1731_v9  ;;  %v1801_v36 = vld [vmem:[%s2020_s12] ss:$0 sm:$0xff] }
 0x719   :  { %v472_v38 = vadd.f32 1e-12, %v470_v37 }
 0x71b   :  { %1460 = vrsqrt.f32 %v472_v38  ;;  %vm480_vm5 = vweird.f32 %v472_v38 }
 0x721   :  { %v1461_v39 = vpop.eup %1460 }
 0x722   :  { %v475_v40 = vmul.f32 %v1461_v39, %v472_v38  ;;  %vm481_vm4 = vweird.f32 %v1461_v39 }
 0x723   :  { %vm482_vm6 = vmor %vm480_vm5, %vm481_vm4 }
 0x724   :  { %v476_v41 = vmul.f32 %v1461_v39, %v475_v40 }
 0x726   :  { %v477_v42 = vmul.f32 0.5, %v476_v41 }
 0x728   :  { %v478_v43 = vsub.f32 1.5, %v477_v42 }
 0x72a   :  { %v479_v44 = vmul.f32 %v1461_v39, %v478_v43 }
 0x72c   :  { %v483_v46 = vsel %vm482_vm6, %v1461_v39, %v479_v44 }
 0x72d   :  { %v494_v47 = vmul.f32 %v483_v46, %v460_v29 }
 0x72f   :  { %v499_v49 = vmul.f32 %v1746_v45, %v494_v47 }
 0x731   :  { %v1755_v50 = vadd.f32 %v1751_v48, %v499_v49 }
 0x733   :  { %1366 = vmatmul.msk.f32.vlgmr.msrb.gmra.mxu1 %vm103_vm1, %v1755_v50 }
 0x735   :  { %v403_v51 = vpop.permute.xlu0 %402 }
 0x736   :  { %v405_v52 = vsel %vm136_vm2, %v332_v32, %v403_v51 }
 0x737   :  { %1365 = vmatmul.msk.f32.gmra.mxu3 %vm103_vm1, %v405_v52 }
 0x7b0   :  { %v535_v55 = vpop.f32.mrf.mxu1 }
 0x7b1   :  { %v536_v56 = vadd.f32 %v1764_v53, %v535_v55 }
 0x7b3   :  { %v543_v58 = vmul.f32 0.70710677, %v536_v56  ;;  %v541_v28 = vmul.f32 0.5, %v536_v56 }
 0x7b5   :  { %v549_v60 = vand.u32 2147483647, %v543_v58  ;;  %vm545_vm7 = vcmp.ge.f32.partialorder %v543_v58, 0.0 }
 0x7b6   :  { %v547_v26 = vsel %vm545_vm7, 1.0, %v1543_v25 }
 0x7b7   :  { %v551_v62 = vmul.f32 0.3275911, %v549_v60  ;;  %v575_v10 = vsub.f32 0.0, %v549_v60 }
 0x7b9   :  { %v553_v0 = vadd.f32 1.0, %v551_v62 }
 0x7ba   :  { %v438_v2 = vpop.f32.mrf.mxu3 }
 0x7bb   :  { %1462 = vrcp.f32 %v553_v0  ;;  %v439_v3 = vadd.f32 %v1725_v11, %v438_v2  ;;  %v577_v11 = vmul.f32 %v575_v10, %v549_v60 }
 0x7bd   :  { %v442_v6 = vadd.f32 %v439_v3, %v1678_v22  ;;  %v579_v16 = vmul.f32 1.442695, %v577_v11 }
 0x7bf   :  { %v448_v7 = vsel %vm103_vm1, %v442_v6, 0.0  ;;  %1464 = vpow2.f32 %v579_v16 }
 0x7c0   :  { %449 = vadd.xlane.f32.xlu0 %v448_v7 }
 0x7c1   :  { %v1463_v8 = vpop.eup %1462 }
 0x7c2   :  { %v557_v12 = vmul.f32 1.0614054, %v1463_v8 }
 0x7c4   :  { %v559_v13 = vadd.f32 -1.4531521, %v557_v12 }
 0x7c5   :  { %v1465_v23 = vpop.eup %1464 }
 0x7c6   :  { %v561_v14 = vmul.f32 %v1463_v8, %v559_v13 }
 0x7c8   :  { %v563_v15 = vadd.f32 1.4214138, %v561_v14 }
 0x7ca   :  { %v565_v17 = vmul.f32 %v1463_v8, %v563_v15 }
 0x7cc   :  { %v567_v18 = vadd.f32 -0.28449672, %v565_v17 }
 0x7ce   :  { %v569_v19 = vmul.f32 %v1463_v8, %v567_v18 }
 0x7d0   :  { %v571_v20 = vadd.f32 0.2548296, %v569_v19 }
 0x7d2   :  { %v573_v21 = vmul.f32 %v1463_v8, %v571_v20 }
 0x7d4   :  { %v583_v22 = vmul.f32 %v1465_v23, %v573_v21 }
 0x7d6   :  { %v585_v24 = vsub.f32 1.0, %v583_v22 }
 0x7d8   :  { %v587_v27 = vmul.f32 %v585_v24, %v547_v26  ;;  %v1431_v26 = vld [vmem:[%s2021_s13] ss:$0 sm:$0xff] }
 0x7da   :  { %v589_v29 = vadd.f32 1.0, %v587_v27 }
 0x7dc   :  { %v591_v30 = vmul.f32 %v589_v29, %v541_v28 }
 0x7de   :  { %1368 = vmatmul.msk.f32.vlgmr.msrb.gmra.mxu2 %vm605_vm8, %v591_v30 }
 0x833   :  { %v450_v31 = vpop.xlane.xlu0 %449 }
 0x834   :  { %v459_v32 = vmul.f32 %v1731_v9, %v450_v31  ;;  %v1432_v31 = vld [vmem:[%s2022_s14] ss:$0 sm:$0xff] }
 0x836   :  { %v461_v33 = vsub.f32 %v442_v6, %v459_v32 }
 0x838   :  { %v463_v34 = vmul.f32 %v461_v33, %v461_v33 }
 0x83a   :  { %v467_v35 = vsel %vm103_vm1, %v463_v34, 0.0 }
 0x83b   :  { %468 = vadd.xlane.f32.xlu1 %v467_v35 }
 0x861   :  { %v629_v37 = vpop.f32.mrf.mxu2 }
 0x862   :  { %v630_v38 = vadd.f32 %v1801_v36, %v629_v37 }
 0x864   :  { %v635_v39 = vadd.f32 %v630_v38, %v1755_v50 }
 0x866   :  { %v639_v40 = vsel %vm103_vm1, %v635_v39, 0.0 }
 0x867   :  { %640 = vadd.xlane.f32.xlu1 %v639_v40 }
 0x8ae   :  { %v469_v41 = vpop.xlane.xlu1 %468 }
 0x8af   :  { %v471_v42 = vmul.f32 %v469_v41, %v1731_v9 }
 0x8b1   :  { %v473_v43 = vadd.f32 1e-12, %v471_v42  ;;  %v1433_v42 = vld [vmem:[%s2012_s4 + $0x1] ss:$0 sm:$0xff] }
 0x8b3   :  { %1466 = vrsqrt.f32 %v473_v43  ;;  %vm490_vm10 = vweird.f32 %v473_v43 }
 0x8b9   :  { %v1467_v44 = vpop.eup %1466 }
 0x8ba   :  { %v485_v46 = vmul.f32 %v1467_v44, %v473_v43  ;;  %vm491_vm9 = vweird.f32 %v1467_v44 }
 0x8bb   :  { %vm492_vm11 = vmor %vm490_vm10, %vm491_vm9 }
 0x8bc   :  { %v486_v47 = vmul.f32 %v1467_v44, %v485_v46 }
 0x8be   :  { %v487_v49 = vmul.f32 0.5, %v486_v47 }
 0x8c0   :  { %v488_v51 = vsub.f32 1.5, %v487_v49 }
 0x8c2   :  { %v489_v52 = vmul.f32 %v1467_v44, %v488_v51 }
 0x8c4   :  { %v493_v54 = vsel %vm492_vm11, %v1467_v44, %v489_v52 }
 0x8c5   :  { %v495_v55 = vmul.f32 %v493_v54, %v461_v33 }
 0x8c7   :  { %v500_v50 = vmul.f32 %v1746_v45, %v495_v55  ;;  %v1371_v45 = vld [vmem:[%s2011_s3 + $0x18] sm:$0xff] }
 0x8c8   :  { %721 = vmatpush.msrb.mxu0 %v1371_v45 }
 0x8c9   :  { %v1809_v56 = vadd.f32 %v1751_v48, %v500_v50  ;;  %v1370_v48 = vld [vmem:[%s2011_s3 + $0x10] sm:$0xff] }
 0x8ca   :  { %722 = vmatpush.msrb.mxu0 %v1370_v48 }
 0x8cb   :  { %1367 = vmatmul.msk.f32.gmra.mxu1 %vm103_vm1, %v1809_v56 }
 0x8da   :  { %v641_v57 = vpop.xlane.xlu1 %640 }
 0x8db   :  { %v645_v58 = vmul.f32 %v641_v57, %v1731_v9 }
 0x8dd   :  { %v647_v59 = vsub.f32 %v635_v39, %v645_v58 }
 0x8df   :  { %v649_v60 = vmul.f32 %v647_v59, %v647_v59 }
 0x8e1   :  { %v651_v61 = vsel %vm103_vm1, %v649_v60, 0.0 }
 0x8e2   :  { %652 = vadd.xlane.f32.xlu1 %v651_v61 }
 0x948   :  { %v538_v62 = vpop.f32.mrf.mxu1 }
 0x949   :  { %v539_v63 = vadd.f32 %v1764_v53, %v538_v62 }
 0x94b   :  { %v544_v0 = vmul.f32 0.70710677, %v539_v63  ;;  %v542_v39 = vmul.f32 0.5, %v539_v63 }
 0x94d   :  { %v550_v1 = vand.u32 2147483647, %v544_v0  ;;  %vm546_vm15 = vcmp.ge.f32.partialorder %v544_v0, 0.0 }
 0x94e   :  { %v548_v35 = vsel %vm546_vm15, 1.0, %v1543_v25 }
 0x94f   :  { %v552_v2 = vmul.f32 0.3275911, %v550_v1  ;;  %v576_v7 = vsub.f32 0.0, %v550_v1 }
 0x951   :  { %v554_v3 = vadd.f32 1.0, %v552_v2  ;;  %v578_v12 = vmul.f32 %v576_v7, %v550_v1 }
 0x953   :  { %1468 = vrcp.f32 %v554_v3  ;;  %v581_v15 = vmul.f32 1.442695, %v578_v12 }
 0x955   :  { %v653_v4 = vpop.xlane.xlu1 %652 }
 0x956   :  { %v657_v5 = vmul.f32 %v653_v4, %v1731_v9 }
 0x958   :  { %v659_v6 = vadd.f32 1e-12, %v657_v5 }
 0x959   :  { %v1469_v53 = vpop.eup %1468 }
 0x95a   :  { %1470 = vrsqrt.f32 %v659_v6  ;;  %v558_v8 = vmul.f32 1.0614054, %v1469_v53  ;;  %vm667_vm13 = vweird.f32 %v659_v6 }
 0x95b   :  { %1472 = vpow2.f32 %v581_v15 }
 0x95c   :  { %v560_v10 = vadd.f32 -1.4531521, %v558_v8 }
 0x95e   :  { %v562_v13 = vmul.f32 %v1469_v53, %v560_v10 }
 0x960   :  { %v1471_v11 = vpop.eup %1470  ;;  %v564_v14 = vadd.f32 1.4214138, %v562_v13 }
 0x961   :  { %v662_v16 = vmul.f32 %v1471_v11, %v659_v6  ;;  %vm668_vm12 = vweird.f32 %v1471_v11  ;;  %v1473_v28 = vpop.eup %1472 }
 0x962   :  { %v566_v17 = vmul.f32 %v1469_v53, %v564_v14  ;;  %vm669_vm14 = vmor %vm667_vm13, %vm668_vm12 }
 0x963   :  { %v663_v18 = vmul.f32 %v1471_v11, %v662_v16 }
 0x964   :  { %v568_v19 = vadd.f32 -0.28449672, %v566_v17 }
 0x965   :  { %v664_v20 = vmul.f32 0.5, %v663_v18 }
 0x966   :  { %v570_v21 = vmul.f32 %v1469_v53, %v568_v19 }
 0x967   :  { %v665_v23 = vsub.f32 1.5, %v664_v20 }
 0x968   :  { %v572_v22 = vadd.f32 0.2548296, %v570_v21 }
 0x969   :  { %v666_v24 = vmul.f32 %v1471_v11, %v665_v23 }
 0x96a   :  { %v574_v27 = vmul.f32 %v1469_v53, %v572_v22 }
 0x96b   :  { %v670_v29 = vsel %vm669_vm14, %v1471_v11, %v666_v24 }
 0x96c   :  { %v681_v30 = vmul.f32 %v670_v29, %v647_v59  ;;  %v584_v32 = vmul.f32 %v1473_v28, %v574_v27 }
 0x96e   :  { %v686_v33 = vmul.f32 %v1431_v26, %v681_v30  ;;  %v586_v34 = vsub.f32 1.0, %v584_v32 }
 0x970   :  { %v1830_v37 = vadd.f32 %v1432_v31, %v686_v33  ;;  %v588_v38 = vmul.f32 %v586_v34, %v548_v35 }
 0x972   :  { %1373 = vmatmul.msk.f32.vlgmr.msrb.gmra.mxu0 %vm103_vm1, %v1830_v37  ;;  %v590_v40 = vadd.f32 1.0, %v588_v38 }
 0x974   :  { %v592_v41 = vmul.f32 %v590_v40, %v542_v39 }
 0x976   :  { %1369 = vmatmul.msk.f32.gmra.mxu2 %vm605_vm8, %v592_v41 }
 0x9ef   :  { %v724_v43 = vpop.f32.mrf.mxu0 }
 0x9f0   :  { %v1838_v44 = vadd.f32 %v1433_v42, %v724_v43 }
 0x9f2   :  { %731 = vrot.lane.b32.xlu2 %v1838_v44, %s1537_s0 }
 0x9f9   :  { %v632_v46 = vpop.f32.mrf.mxu2 }
 0x9fa   :  { %v633_v47 = vadd.f32 %v1801_v36, %v632_v46 }
 0x9fc   :  { %v636_v49 = vadd.f32 %v633_v47, %v1809_v56 }
 0x9fe   :  { %v642_v51 = vsel %vm103_vm1, %v636_v49, 0.0 }
 0x9ff   :  { %643 = vadd.xlane.f32.xlu1 %v642_v51 }
 0xa4c   :  { %v732_v52 = vpop.permute.xlu2 %731 }
 0xa4d   :  { %1375 = vmatpush.xpose.msk.msra.mxu3 %vm136_vm2, %v732_v52 }
 0xa50   :  { %1376 = vmatmul.msk.f32.vlgmr.msra.gmra.mxu3 %vm136_vm2, %v1838_v44 }
 0xa72   :  { %v644_v54 = vpop.xlane.xlu1 %643 }
 0xa73   :  { %v646_v55 = vmul.f32 %v644_v54, %v1731_v9 }
 0xa75   :  { %v648_v50 = vsub.f32 %v636_v49, %v646_v55 }
 0xa77   :  { %v650_v57 = vmul.f32 %v648_v50, %v648_v50 }
 0xa79   :  { %v654_v58 = vsel %vm103_vm1, %v650_v57, 0.0 }
 0xa7a   :  { %655 = vadd.xlane.f32.xlu1 %v654_v58 }
 0xa93   :  { %797 = vrot.lane.b32.xlu1 %v1838_v44, %s1536_s29 }
 0xad3   :  { %v754_v36 = vpop.f32.mrf.mxu3 }
 0xad4   :  { %v757_v56 = vmul.f32 0.35355338, %v754_v36 }
 0xad6   :  { %v758_v59 = vsel %vm136_vm2, %v757_v56, -inf }
 0xad7   :  { %759 = vmax.xlane.f32.xlu0 %v758_v59  ;;  %v1388_v59 = vld [vmem:[%s2013_s5 + $0x18] sm:$0xff] }
 0xaeb   :  { %795 = vrot.lane.b32.xlu0 %v1838_v44, %s1538_s2 }
 0xaed   :  { %v656_v60 = vpop.xlane.xlu1 %655 }
 0xaee   :  { %v658_v61 = vmul.f32 %v656_v60, %v1731_v9 }
 0xaf0   :  { %v660_v62 = vadd.f32 1e-12, %v658_v61 }
 0xaf2   :  { %1474 = vrsqrt.f32 %v660_v62  ;;  %vm677_vm4 = vweird.f32 %v660_v62 }
 0xaf3   :  { %769 = vrot.lane.b32.xlu0 %v1838_v44, %s1539_s19 }
 0xaf8   :  { %v1475_v63 = vpop.eup %1474 }
 0xaf9   :  { %v672_v0 = vmul.f32 %v1475_v63, %v660_v62  ;;  %vm678_vm3 = vweird.f32 %v1475_v63 }
 0xafa   :  { %vm679_vm5 = vmor %vm677_vm4, %vm678_vm3 }
 0xafb   :  { %v673_v45 = vmul.f32 %v1475_v63, %v672_v0 }
 0xafd   :  { %v674_v48 = vmul.f32 0.5, %v673_v45 }
 0xaff   :  { %v675_v1 = vsub.f32 1.5, %v674_v48 }
 0xb01   :  { %v676_v2 = vmul.f32 %v1475_v63, %v675_v1  ;;  %v1387_v1 = vld [vmem:[%s2013_s5 + $0x10] sm:$0xff] }
 0xb03   :  { %v680_v3 = vsel %vm679_vm5, %v1475_v63, %v676_v2 }
 0xb04   :  { %v682_v4 = vmul.f32 %v680_v3, %v648_v50 }
 0xb05   :  { %v798_v5 = vpop.permute.xlu1 %797 }
 0xb06   :  { %1378 = vmatpush.xpose.msk.msra.mxu0 %vm136_vm2, %v798_v5  ;;  %v687_v6 = vmul.f32 %v1431_v26, %v682_v4  ;;  %v1434_v5 = vld [vmem:[%s2014_s6 + $0x1] ss:$0 sm:$0xff] }
 0xb08   :  { %v1859_v53 = vadd.f32 %v1432_v31, %v687_v6 }
 0xb0a   :  { %1374 = vmatmul.msk.f32.gmra.mxu0 %vm103_vm1, %v1859_v53 }
 0xb4a   :  { %v760_v7 = vpop.xlane.xlu0 %759 }
 0xb4b   :  { %v761_v8 = vsub.f32 %v757_v56, %v760_v7 }
 0xb4d   :  { %v762_v10 = vmul.f32 1.442695, %v761_v8 }
 0xb4f   :  { %1476 = vpow2.f32 %v762_v10 }
 0xb55   :  { %v1477_v12 = vpop.eup %1476 }
 0xb56   :  { %v764_v13 = vsel %vm136_vm2, %v1477_v12, 0.0 }
 0xb57   :  { %765 = vadd.xlane.f32.xlu1 %v764_v13 }
 0xb5d   :  { %v796_v11 = vpop.permute.xlu0 %795 }
 0xb5e   :  { %1379 = vmatmul.msk.f32.vlgmr.msra.gmra.mxu0 %vm136_vm2, %v796_v11 }
 0xb65   :  { %v770_v14 = vpop.permute.xlu0 %769 }
 0xb66   :  { %790 = vmatpush.msra.mxu1 %v770_v14 }
 0xb87   :  { %v727_v15 = vpop.f32.mrf.mxu0 }
 0xb88   :  { %v728_v16 = vadd.f32 %v1433_v42, %v727_v15 }
 0xb8a   :  { %933 = vrot.lane.b32.xlu2 %v728_v16, %s1536_s29 }
 0xb92   :  { %931 = vrot.lane.b32.xlu2 %v728_v16, %s1538_s2  ;;  %s1545_s2 = smov 128  }
 0xb9a   :  { %867 = vrot.lane.b32.xlu2 %v728_v16, %s1537_s0 }
 0xbca   :  { %v766_v17 = vpop.xlane.xlu1 %765 }
 0xbcb   :  { %1478 = vrcp.f32 %v766_v17 }
 0xbd1   :  { %v1479_v18 = vpop.eup %1478 }
 0xbd2   :  { %v768_v19 = vmul.f32 %v1479_v18, %v1477_v12 }
 0xbd4   :  { %1377 = vmatmul.msk.f32.vlgmr.msra.gmra.mxu1 %vm136_vm2, %v768_v19 }
 0xbdb   :  { %v820_v20 = vpop.f32.mrf.mxu0 }
 0xbdc   :  { %v823_v21 = vmul.f32 0.35355338, %v820_v20 }
 0xbde   :  { %v824_v23 = vsel %vm136_vm2, %v823_v21, -inf }
 0xbdf   :  { %825 = vmax.xlane.f32.xlu0 %v824_v23  ;;  %v1395_v23 = vld [vmem:[%s2017_s9 + $0x18] sm:$0xff] }
 0xbe4   :  { %v934_v22 = vpop.permute.xlu2 %933 }
 0xbe5   :  { %1384 = vmatpush.xpose.msk.msrb.mxu0 %vm136_vm2, %v934_v22  ;;  %v1394_v22 = vld [vmem:[%s2017_s9 + $0x10] sm:$0xff] }
 0xbec   :  { %v932_v24 = vpop.permute.xlu2 %931 }
 0xbed   :  { %1385 = vmatmul.msk.f32.vlgmr.msrb.gmra.mxu0 %vm136_vm2, %v932_v24 }
 0xbf4   :  { %v868_v26 = vpop.permute.xlu2 %867 }
 0xbf5   :  { %1381 = vmatpush.xpose.msk.msrb.mxu1 %vm136_vm2, %v868_v26 }
 0xbf8   :  { %1382 = vmatmul.msk.f32.vlgmr.msrb.gmra.mxu1 %vm136_vm2, %v728_v16 }
 0xbf9   :  { %1030 = vmatpush.msra.mxu1 %v1388_v59 }
 0xbfb   :  { %1031 = vmatpush.msra.mxu1 %v1387_v1  ;;  %v1401_v1 = vld [vmem:[%s2019_s11 + $0x50] sm:$0xff] }
 0xc51   :  { %v792_v34 = vpop.f32.mrf.mxu1 }
 0xc52   :  { %v826_v27 = vpop.xlane.xlu0 %825 }
 0xc53   :  { %v827_v28 = vsub.f32 %v823_v21, %v826_v27 }
 0xc55   :  { %v828_v29 = vmul.f32 1.442695, %v827_v28 }
 0xc57   :  { %1480 = vpow2.f32 %v828_v29 }
 0xc5d   :  { %v1481_v30 = vpop.eup %1480 }
 0xc5e   :  { %v830_v31 = vsel %vm136_vm2, %v1481_v30, 0.0 }
 0xc5f   :  { %831 = vadd.xlane.f32.xlu1 %v830_v31 }
 0xc6a   :  { %v956_v32 = vpop.f32.mrf.mxu0 }
 0xc6b   :  { %v959_v33 = vmul.f32 0.35355338, %v956_v32 }
 0xc6d   :  { %v960_v35 = vsel %vm136_vm2, %v959_v33, -inf }
 0xc6e   :  { %961 = vmax.xlane.f32.xlu2 %v960_v35 }
 0xc75   :  { %v890_v38 = vpop.f32.mrf.mxu1 }
 0xc76   :  { %v893_v39 = vmul.f32 0.35355338, %v890_v38  ;;  %v1436_v38 = vld [vmem:[%s2016_s8 + $0x1] ss:$0 sm:$0xff] }
 0xc78   :  { %v894_v40 = vsel %vm136_vm2, %v893_v39, -inf }
 0xc79   :  { %895 = vmax.xlane.f32.xlu1 %v894_v40 }
 0xc86   :  { %835 = vrot.lane.b32.xlu2 %v1838_v44, %s1540_s1 }
 0xc92   :  { %971 = vrot.lane.b32.xlu1 %v728_v16, %s1540_s1 }
 0xcd2   :  { %v832_v41 = vpop.xlane.xlu1 %831 }
 0xcd3   :  { %1482 = vrcp.f32 %v832_v41 }
 0xcd9   :  { %v1483_v47 = vpop.eup %1482 }
 0xcda   :  { %v834_v49 = vmul.f32 %v1483_v47, %v1481_v30 }
 0xce1   :  { %v962_v42 = vpop.xlane.xlu2 %961 }
 0xce2   :  { %v963_v43 = vsub.f32 %v959_v33, %v962_v42  ;;  %v1435_v33 = vld [vmem:[%s2015_s7 + $0x1] ss:$0 sm:$0xff] }
 0xce4   :  { %v964_v46 = vmul.f32 1.442695, %v963_v43 }
 0xce6   :  { %1484 = vpow2.f32 %v964_v46 }
 0xce9   :  { %v836_v51 = vpop.permute.xlu2 %835 }
 0xcea   :  { %856 = vmatpush.msrb.mxu3 %v836_v51 }
 0xceb   :  { %1380 = vmatmul.msk.f32.vlgmr.msrb.gmra.mxu3 %vm136_vm2, %v834_v49 }
 0xcec   :  { %v1485_v52 = vpop.eup %1484  ;;  %v896_v54 = vpop.xlane.xlu1 %895 }
 0xced   :  { %v897_v55 = vsub.f32 %v893_v39, %v896_v54  ;;  %v966_v50 = vsel %vm136_vm2, %v1485_v52, 0.0  ;;  %v1930_v54 = vld [vmem:[%s2018_s10 + $0x1] ss:$0 sm:$0xff]  ;;  %s1336_s10 = sshll.u32 %s2025_s17, 4  ;;  %s1337_s10 = int_to_ptr.hbm [resolvable:$true] %s1336_s10 }
 0xcee   :  { %967 = vadd.xlane.f32.xlu0 %v966_v50 }
 0xcef   :  { %v898_v44 = vmul.f32 1.442695, %v897_v55  ;;  %v1406_v55 = vld [vmem:[%s2019_s11 + $0x78] sm:$0xff] }
 0xcf0   :  { %1216 = vmatpush.msra.mxu0 %v1406_v55 }
 0xcf1   :  { %1486 = vpow2.f32 %v898_v44 }
 0xcf7   :  { %v1487_v57 = vpop.eup %1486 }
 0xcf8   :  { %v900_v58 = vsel %vm136_vm2, %v1487_v57, 0.0 }
 0xcf9   :  { %901 = vadd.xlane.f32.xlu0 %v900_v58 }
 0xd04   :  { %v972_v36 = vpop.permute.xlu1 %971 }
 0xd05   :  { %992 = vmatpush.msra.mxu3 %v972_v36 }
 0xd0d   :  { %905 = vrot.lane.b32.xlu0 %v728_v16, %s1539_s19 }
 0xd61   :  { %v968_v56 = vpop.xlane.xlu0 %967 }
 0xd62   :  { %1488 = vrcp.f32 %v968_v56  ;;  %v1404_v56 = vld [vmem:[%s2019_s11 + $0x68] sm:$0xff] }
 0xd68   :  { %v1489_v60 = vpop.eup %1488 }
 0xd69   :  { %v970_v61 = vmul.f32 %v1489_v60, %v1485_v52 }
 0xd6b   :  { %1386 = vmatmul.msk.f32.vlgmr.msra.gmra.mxu3 %vm136_vm2, %v970_v61  ;;  %v1403_v61 = vld [vmem:[%s2019_s11 + $0x60] sm:$0xff] }
 0xd6c   :  { %v902_v63 = vpop.xlane.xlu0 %901 }
 0xd6d   :  { %1490 = vrcp.f32 %v902_v63 }
 0xd6e   :  { %v858_v62 = vpop.f32.mrf.mxu3 }
 0xd6f   :  { %862 = vrot.lane.b32.xlu2 %v858_v62, %s1541_s21 }
 0xd73   :  { %v1491_v0 = vpop.eup %1490 }
 0xd74   :  { %v904_v45 = vmul.f32 %v1491_v0, %v1487_v57  ;;  %v1405_v57 = vld [vmem:[%s2019_s11 + $0x70] sm:$0xff]  ;;  %v1402_v0 = vld [vmem:[%s2019_s11 + $0x58] sm:$0xff] }
 0xd75   :  { %1217 = vmatpush.msra.mxu0 %v1405_v57 }
 0xd77   :  { %1218 = vmatpush.msra.mxu0 %v1404_v56 }
 0xd79   :  { %1219 = vmatpush.msra.mxu0 %v1403_v61 }
 0xd7b   :  { %1220 = vmatpush.msra.mxu0 %v1402_v0 }
 0xd7d   :  { %1221 = vmatpush.msra.mxu0 %v1401_v1 }
 0xd7f   :  { %v906_v48 = vpop.permute.xlu0 %905 }
 0xd80   :  { %926 = vmatpush.msra.mxu2 %v906_v48 }
 0xd81   :  { %1383 = vmatmul.msk.f32.vlgmr.msra.gmra.mxu2 %vm136_vm2, %v904_v45 }
 0xd82   :  { %1127 = vmatpush.msrb.mxu2 %v1395_v23 }
 0xd84   :  { %1128 = vmatpush.msrb.mxu2 %v1394_v22 }
 0xdc9   :  { %v863_v2 = vpop.permute.xlu2 %862 }
 0xdca   :  { %v865_v3 = vsel %vm136_vm2, %v792_v34, %v863_v2 }
 0xdcb   :  { %1390 = vmatmul.msk.f32.vlgmr.msra.gmra.mxu1 %vm103_vm1, %v865_v3  ;;  %v1400_v3 = vld [vmem:[%s2019_s11 + $0x48] sm:$0xff] }
 0xdcc   :  { %1222 = vmatpush.msra.mxu0 %v1400_v3 }
 0xdee   :  { %v994_v4 = vpop.f32.mrf.mxu3 }
 0xdef   :  { %998 = vrot.lane.b32.xlu1 %v994_v4, %s1541_s21 }
 0xe04   :  { %v928_v12 = vpop.f32.mrf.mxu2 }
 0xe48   :  { %v1033_v6 = vpop.f32.mrf.mxu1 }
 0xe49   :  { %v1034_v7 = vadd.f32 %v1434_v5, %v1033_v6 }
 0xe4b   :  { %v1039_v8 = vadd.f32 %v1034_v7, %v1830_v37 }
 0xe4d   :  { %v1045_v10 = vsel %vm103_vm1, %v1039_v8, 0.0 }
 0xe4e   :  { %1046 = vadd.xlane.f32.xlu2 %v1045_v10 }
 0xe61   :  { %v999_v13 = vpop.permute.xlu1 %998 }
 0xe62   :  { %v1001_v11 = vsel %vm136_vm2, %v928_v12, %v999_v13 }
 0xe63   :  { %1391 = vmatmul.msk.f32.gmra.mxu1 %vm103_vm1, %v1001_v11 }
 0xec1   :  { %v1047_v14 = vpop.xlane.xlu2 %1046 }
 0xec2   :  { %v1051_v15 = vmul.f32 %v1047_v14, %v1731_v9 }
 0xec4   :  { %v1053_v16 = vsub.f32 %v1039_v8, %v1051_v15 }
 0xec6   :  { %v1055_v17 = vmul.f32 %v1053_v16, %v1053_v16 }
 0xec8   :  { %v1057_v18 = vsel %vm103_vm1, %v1055_v17, 0.0 }
 0xec9   :  { %1058 = vadd.xlane.f32.xlu1 %v1057_v18 }
 0xee0   :  { %v1036_v19 = vpop.f32.mrf.mxu1 }
 0xee1   :  { %v1037_v20 = vadd.f32 %v1434_v5, %v1036_v19  ;;  %v1399_v5 = vld [vmem:[%s2019_s11 + $0x40] sm:$0xff] }
 0xee2   :  { %1223 = vmatpush.msra.mxu0 %v1399_v5 }
 0xee3   :  { %v1040_v37 = vadd.f32 %v1037_v20, %v1859_v53 }
 0xee5   :  { %v1048_v21 = vsel %vm103_vm1, %v1040_v37, 0.0 }
 0xee6   :  { %1049 = vadd.xlane.f32.xlu0 %v1048_v21 }
 0xf3c   :  { %v1059_v24 = vpop.xlane.xlu1 %1058 }
 0xf3d   :  { %v1063_v26 = vmul.f32 %v1059_v24, %v1731_v9 }
 0xf3f   :  { %v1065_v27 = vadd.f32 1e-12, %v1063_v26 }
 0xf41   :  { %1492 = vrsqrt.f32 %v1065_v27  ;;  %vm1073_vm6 = vweird.f32 %v1065_v27 }
 0xf47   :  { %v1493_v28 = vpop.eup %1492 }
 0xf48   :  { %v1068_v53 = vmul.f32 %v1493_v28, %v1065_v27  ;;  %vm1074_vm2 = vweird.f32 %v1493_v28 }
 0xf49   :  { %vm1075_vm7 = vmor %vm1073_vm6, %vm1074_vm2 }
 0xf4a   :  { %v1069_v29 = vmul.f32 %v1493_v28, %v1068_v53 }
 0xf4c   :  { %v1070_v30 = vmul.f32 0.5, %v1069_v29 }
 0xf4e   :  { %v1071_v31 = vsub.f32 1.5, %v1070_v30 }
 0xf50   :  { %v1072_v32 = vmul.f32 %v1493_v28, %v1071_v31 }
 0xf52   :  { %v1076_v34 = vsel %vm1075_vm7, %v1493_v28, %v1072_v32 }
 0xf53   :  { %v1087_v35 = vmul.f32 %v1076_v34, %v1053_v16 }
 0xf55   :  { %v1092_v39 = vmul.f32 %v1435_v33, %v1087_v35 }
 0xf57   :  { %v1920_v40 = vadd.f32 %v1436_v38, %v1092_v39  ;;  %v1438_v39 = vld [vmem:[%s2020_s12 + $0x1] ss:$0 sm:$0xff] }
 0xf59   :  { %v1050_v41 = vpop.xlane.xlu0 %1049  ;;  %1397 = vmatmul.msk.f32.vlgmr.msrb.gmra.mxu2 %vm103_vm1, %v1920_v40 }
 0xf5a   :  { %v1052_v42 = vmul.f32 %v1050_v41, %v1731_v9 }
 0xf5c   :  { %v1054_v43 = vsub.f32 %v1040_v37, %v1052_v42 }
 0xf5e   :  { %v1056_v46 = vmul.f32 %v1054_v43, %v1054_v43 }
 0xf60   :  { %v1060_v47 = vsel %vm103_vm1, %v1056_v46, 0.0 }
 0xf61   :  { %1061 = vadd.xlane.f32.xlu2 %v1060_v47 }
 0xfd4   :  { %v1062_v49 = vpop.xlane.xlu2 %1061 }
 0xfd5   :  { %v1064_v51 = vmul.f32 %v1062_v49, %v1731_v9 }
 0xfd7   :  { %v1066_v52 = vadd.f32 1e-12, %v1064_v51 }
 0xfd9   :  { %1494 = vrsqrt.f32 %v1066_v52  ;;  %vm1083_vm10 = vweird.f32 %v1066_v52 }
 0xfdc   :  { %v1130_v50 = vpop.f32.mrf.mxu2 }
 0xfdd   :  { %v1131_v44 = vadd.f32 %v1930_v54, %v1130_v50 }
 0xfdf   :  { %v1495_v58 = vpop.eup %1494  ;;  %v1138_v36 = vmul.f32 0.70710677, %v1131_v44  ;;  %v1136_v53 = vmul.f32 0.5, %v1131_v44 }
 0xfe0   :  { %v1078_v59 = vmul.f32 %v1495_v58, %v1066_v52  ;;  %vm1084_vm9 = vweird.f32 %v1495_v58 }
 0xfe1   :  { %v1144_v60 = vand.u32 2147483647, %v1138_v36  ;;  %vm1085_vm11 = vmor %vm1083_vm10, %vm1084_vm9  ;;  %vm1140_vm12 = vcmp.ge.f32.partialorder %v1138_v36, 0.0 }
 0xfe2   :  { %v1079_v62 = vmul.f32 %v1495_v58, %v1078_v59  ;;  %v1142_v27 = vsel %vm1140_vm12, 1.0, %v1543_v25 }
 0xfe3   :  { %v1146_v63 = vmul.f32 0.3275911, %v1144_v60  ;;  %v1170_v10 = vsub.f32 0.0, %v1144_v60 }
 0xfe4   :  { %v1080_v45 = vmul.f32 0.5, %v1079_v62 }
 0xfe5   :  { %v1148_v48 = vadd.f32 1.0, %v1146_v63  ;;  %v1172_v15 = vmul.f32 %v1170_v10, %v1144_v60  ;;  %v1292_v10 = vld [vmem:[%s2023_s15 + $0x8] sm:$0xff] }
 0xfe6   :  { %v1081_v2 = vsub.f32 1.5, %v1080_v45  ;;  %1317 = vmatpush.msrb.mxu3 %v1292_v10 }
 0xfe7   :  { %1496 = vrcp.f32 %v1148_v48  ;;  %v1174_v18 = vmul.f32 1.442695, %v1172_v15 }
 0xfe8   :  { %v1082_v4 = vmul.f32 %v1495_v58, %v1081_v2 }
 0xfe9   :  { %1498 = vpow2.f32 %v1174_v18 }
 0xfea   :  { %v1086_v6 = vsel %vm1085_vm11, %v1495_v58, %v1082_v4 }
 0xfeb   :  { %v1088_v7 = vmul.f32 %v1086_v6, %v1054_v43 }
 0xfed   :  { %v1497_v8 = vpop.eup %1496  ;;  %v1093_v12 = vmul.f32 %v1435_v33, %v1088_v7 }
 0xfee   :  { %v1152_v13 = vmul.f32 1.0614054, %v1497_v8 }
 0xfef   :  { %v1957_v11 = vadd.f32 %v1436_v38, %v1093_v12  ;;  %v1499_v22 = vpop.eup %1498  ;;  %v1291_v12 = vld [vmem:[%s2023_s15] sm:$0xff] }
 0xff0   :  { %v1154_v14 = vadd.f32 -1.4531521, %v1152_v13  ;;  %1318 = vmatpush.msrb.mxu3 %v1291_v12 }
 0xff1   :  { %1398 = vmatmul.msk.f32.gmra.mxu2 %vm103_vm1, %v1957_v11 }
 0xff2   :  { %v1156_v16 = vmul.f32 %v1497_v8, %v1154_v14 }
 0xff4   :  { %v1158_v17 = vadd.f32 1.4214138, %v1156_v16 }
 0xff6   :  { %v1160_v19 = vmul.f32 %v1497_v8, %v1158_v17 }
 0xff8   :  { %v1162_v20 = vadd.f32 -0.28449672, %v1160_v19 }
 0xffa   :  { %v1164_v37 = vmul.f32 %v1497_v8, %v1162_v20 }
 0xffc   :  { %v1166_v21 = vadd.f32 0.2548296, %v1164_v37  ;;  %v1439_v37 = vld [vmem:[%s2021_s13 + $0x1] ss:$0 sm:$0xff] }
 0xffe   :  { %v1168_v23 = vmul.f32 %v1497_v8, %v1166_v21 }
0x1000   :  { %v1178_v24 = vmul.f32 %v1499_v22, %v1168_v23  ;;  %v1440_v22 = vld [vmem:[%s2022_s14 + $0x1] ss:$0 sm:$0xff] }
0x1002   :  { %v1180_v26 = vsub.f32 1.0, %v1178_v24 }
0x1004   :  { %v1182_v28 = vmul.f32 %v1180_v26, %v1142_v27 }
0x1006   :  { %v1184_v29 = vadd.f32 1.0, %v1182_v28 }
0x1008   :  { %v1186_v30 = vmul.f32 %v1184_v29, %v1136_v53 }
0x100a   :  { %1408 = vmatmul.msk.f32.vlgmr.msra.gmra.mxu0 %vm605_vm8, %v1186_v30 }
0x1074   :  { %v1133_v31 = vpop.f32.mrf.mxu2 }
0x1075   :  { %v1134_v32 = vadd.f32 %v1930_v54, %v1133_v31 }
0x1077   :  { %v1139_v33 = vmul.f32 0.70710677, %v1134_v32 }
0x1079   :  { %v1145_v34 = vand.u32 2147483647, %v1139_v33  ;;  %vm1141_vm13 = vcmp.ge.f32.partialorder %v1139_v33, 0.0 }
0x107a   :  { %v1143_v63 = vsel %vm1141_vm13, 1.0, %v1543_v25 }
0x107b   :  { %v1147_v35 = vmul.f32 0.3275911, %v1145_v34  ;;  %v1171_v42 = vsub.f32 0.0, %v1145_v34 }
0x107d   :  { %v1149_v38 = vadd.f32 1.0, %v1147_v35  ;;  %v1173_v51 = vmul.f32 %v1171_v42, %v1145_v34  ;;  %v1441_v34 = vld [vmem:[%s2024_s16] ss:$0 sm:$0xff]  ;;  %s1544_s16 = smov [#allocation2]  }
0x107e   :  { %s1334_s27 = sshll.u32 %s1544_s16, 4  ;;  %s1335_s27 = int_to_ptr.vmem [resolvable:$true] %s1334_s27 }
0x107f   :  { %1500 = vrcp.f32 %v1149_v38  ;;  %v1176_v44 = vmul.f32 1.442695, %v1173_v51 }
0x1081   :  { %1502 = vpow2.f32 %v1176_v44 }
0x1085   :  { %v1501_v41 = vpop.eup %1500 }
0x1086   :  { %v1153_v43 = vmul.f32 1.0614054, %v1501_v41 }
0x1087   :  { %v1225_v46 = vpop.f32.mrf.mxu0  ;;  %v1503_v60 = vpop.eup %1502 }
0x1088   :  { %v1226_v47 = vadd.f32 %v1438_v39, %v1225_v46  ;;  %v1155_v49 = vadd.f32 -1.4531521, %v1153_v43 }
0x108a   :  { %v1231_v52 = vadd.f32 %v1226_v47, %v1920_v40  ;;  %v1157_v55 = vmul.f32 %v1501_v41, %v1155_v49  ;;  %v1137_v40 = vmul.f32 0.5, %v1134_v32 }
0x108c   :  { %v1237_v54 = vsel %vm103_vm1, %v1231_v52, 0.0  ;;  %v1159_v50 = vadd.f32 1.4214138, %v1157_v55 }
0x108d   :  { %1238 = vadd.xlane.f32.xlu0 %v1237_v54 }
0x108e   :  { %v1161_v57 = vmul.f32 %v1501_v41, %v1159_v50 }
0x1090   :  { %v1163_v58 = vadd.f32 -0.28449672, %v1161_v57  ;;  %v1509_v57 = vld [vmem:[%s2031_s20 + $0x8] sm:$0xff] }
0x1092   :  { %v1165_v36 = vmul.f32 %v1501_v41, %v1163_v58 }
0x1094   :  { %v1167_v56 = vadd.f32 0.2548296, %v1165_v36 }
0x1096   :  { %v1169_v59 = vmul.f32 %v1501_v41, %v1167_v56  ;;  %v1508_v41 = vld [vmem:[%s2031_s20] sm:$0xff] }
0x1098   :  { %v1179_v61 = vmul.f32 %v1503_v60, %v1169_v59 }
0x109a   :  { %v1181_v62 = vsub.f32 1.0, %v1179_v61 }
0x109c   :  { %v1183_v0 = vmul.f32 %v1181_v62, %v1143_v63 }
0x109e   :  { %v1185_v45 = vadd.f32 1.0, %v1183_v0 }
0x10a0   :  { %v1187_v48 = vmul.f32 %v1185_v45, %v1137_v40 }
0x10a2   :  { %1409 = vmatmul.msk.f32.gmra.mxu0 %vm605_vm8, %v1187_v48 }
0x1100   :  { %v1239_v1 = vpop.xlane.xlu0 %1238 }
0x1101   :  { %v1243_v2 = vmul.f32 %v1239_v1, %v1731_v9 }
0x1103   :  { %v1245_v3 = vsub.f32 %v1231_v52, %v1243_v2 }
0x1105   :  { %v1247_v4 = vmul.f32 %v1245_v3, %v1245_v3 }
0x1107   :  { %v1249_v5 = vsel %vm103_vm1, %v1247_v4, 0.0 }
0x1108   :  { %1250 = vadd.xlane.f32.xlu2 %v1249_v5 }
0x111f   :  { %v1228_v6 = vpop.f32.mrf.mxu0 }
0x1120   :  { %v1229_v7 = vadd.f32 %v1438_v39, %v1228_v6 }
0x1122   :  { %v1232_v8 = vadd.f32 %v1229_v7, %v1957_v11 }
0x1124   :  { %v1240_v25 = vsel %vm103_vm1, %v1232_v8, 0.0 }
0x1125   :  { %1241 = vadd.xlane.f32.xlu1 %v1240_v25 }
0x117b   :  { %v1251_v13 = vpop.xlane.xlu2 %1250 }
0x117c   :  { %v1255_v14 = vmul.f32 %v1251_v13, %v1731_v9 }
0x117e   :  { %v1257_v15 = vadd.f32 1e-12, %v1255_v14 }
0x1180   :  { %1504 = vrsqrt.f32 %v1257_v15  ;;  %vm1265_vm14 = vweird.f32 %v1257_v15 }
0x1186   :  { %v1505_v16 = vpop.eup %1504 }
0x1187   :  { %v1260_v11 = vmul.f32 %v1505_v16, %v1257_v15  ;;  %vm1266_vm8 = vweird.f32 %v1505_v16 }
0x1188   :  { %vm1267_vm15 = vmor %vm1265_vm14, %vm1266_vm8 }
0x1189   :  { %v1261_v17 = vmul.f32 %v1505_v16, %v1260_v11 }
0x118b   :  { %v1262_v18 = vmul.f32 0.5, %v1261_v17 }
0x118d   :  { %v1263_v19 = vsub.f32 1.5, %v1262_v18 }
0x118f   :  { %v1264_v20 = vmul.f32 %v1505_v16, %v1263_v19 }
0x1191   :  { %v1268_v21 = vsel %vm1267_vm15, %v1505_v16, %v1264_v20 }
0x1192   :  { %v1279_v23 = vmul.f32 %v1268_v21, %v1245_v3 }
0x1194   :  { %v1284_v24 = vmul.f32 %v1439_v37, %v1279_v23 }
0x1196   :  { %v1289_v26 = vadd.f32 %v1440_v22, %v1284_v24 }
0x1198   :  { %v1242_v27 = vpop.xlane.xlu1 %1241  ;;  %1412 = vmatmul.msk.f32.vlgmr.msrb.gmra.mxu3 %vm103_vm1, %v1289_v26 }
0x1199   :  { %v1244_v28 = vmul.f32 %v1242_v27, %v1731_v9 }
0x119b   :  { %v1246_v53 = vsub.f32 %v1232_v8, %v1244_v28 }
0x119d   :  { %v1248_v29 = vmul.f32 %v1246_v53, %v1246_v53 }
0x119f   :  { %v1252_v30 = vsel %vm103_vm1, %v1248_v29, 0.0 }
0x11a0   :  { %1253 = vadd.xlane.f32.xlu0 %v1252_v30 }
0x1213   :  { %v1254_v31 = vpop.xlane.xlu0 %1253 }
0x1214   :  { %v1256_v32 = vmul.f32 %v1254_v31, %v1731_v9 }
0x1216   :  { %v1258_v33 = vadd.f32 1e-12, %v1256_v32 }
0x1218   :  { %1506 = vrsqrt.f32 %v1258_v33  ;;  %vm1275_vm4 = vweird.f32 %v1258_v33 }
0x121b   :  { %v1320_v35 = vpop.f32.mrf.mxu3 }
0x121c   :  { %v1321_v38 = vadd.f32 %v1441_v34, %v1320_v35 }
0x121e   :  { %v1507_v39 = vpop.eup %1506  ;;  %v1326_v42 = vadd.f32 %v1508_v41, %v1321_v38 }
0x121f   :  { %v1270_v43 = vmul.f32 %v1507_v39, %v1258_v33  ;;  %vm1276_vm3 = vweird.f32 %v1507_v39 }
0x1220   :  { %1328 = vst.msk [vmem:[#allocation2] sm:$0xff] %vm67_vm0, %v1326_v42  ;;  %vm1277_vm5 = vmor %vm1275_vm4, %vm1276_vm3 }
0x1221   :  { %v1271_v46 = vmul.f32 %v1507_v39, %v1270_v43 }
0x1223   :  { %v1272_v47 = vmul.f32 0.5, %v1271_v46 }
0x1225   :  { %v1273_v9 = vsub.f32 1.5, %v1272_v47 }
0x1227   :  { %v1274_v49 = vmul.f32 %v1507_v39, %v1273_v9 }
0x1229   :  { %v1278_v51 = vsel %vm1277_vm5, %v1507_v39, %v1274_v49 }
0x122a   :  { %v1280_v52 = vmul.f32 %v1278_v51, %v1246_v53 }
0x122c   :  { %v1285_v55 = vmul.f32 %v1439_v37, %v1280_v52 }
0x122e   :  { %v1290_v54 = vadd.f32 %v1440_v22, %v1285_v55 }
0x1230   :  { %1413 = vmatmul.msk.f32.gmra.mxu3 %vm103_vm1, %v1290_v54 }
0x12b3   :  { %v1323_v50 = vpop.f32.mrf.mxu3 }
0x12b4   :  { %v1324_v44 = vadd.f32 %v1441_v34, %v1323_v50 }
0x12b6   :  { %v1327_v58 = vadd.f32 %v1509_v57, %v1324_v44 }
0x12b8   :  { %1329 = vst.msk [vmem:[#allocation2 + $0x8] sm:$0xff] %vm67_vm0, %v1327_v58 }
0x12b9   :  { %1342 = dma.vmem_to_hbm [thread:$0]  %s1335_s27, 256, %s1337_s10, [#allocation3], %s1545_s2, %s1545_s2, %s1541_s21  }
0x12ba   :  { %1534 = dma.done.wait [#allocation3], 256  }
0x12bb   :  { %1535 = vsyncadd [#allocation3], 4294967040 }
0x12bc   :  { %1347 = vsyncpa [#allocation3], 1 }

</bundles_post_ra>
